<compile_context>
chip_gen: v7x
topology: tpu7x:2x2x1
jax: 0.10.0
libtpu: 0.0.40
codegen_flags: <defaults>
</compile_context>

<pallas_src>
import jax
import jax.numpy as jnp
from jax.experimental import pallas as pl
from jax.experimental.pallas import tpu as pltpu


def _round_up(a: int, m: int) -> int:
    return pl.cdiv(a, m) * m


def record_encoder(x, position_hv, level_hv, *, low, high, tb=128, td=512):
    """x: (B, size) f32; position_hv: (size, D) uint8 {0,1}; level_hv: (levels, D) uint8 {0,1}."""
    B, size = x.shape
    levels, D = level_hv.shape
    inv_span = 1.0 / (high - low)

    # --- host-side precompute: XOR table (pure function of module parameters) ---
    p = position_hv.astype(jnp.float32)                       # (size, D)
    l = level_hv.astype(jnp.float32)                          # (levels, D)
    w = p[:, None, :] + l[None, :, :] - 2.0 * p[:, None, :] * l[None, :, :]  # XOR on {0,1}
    w = w.reshape(size * levels, D).astype(jnp.bfloat16)      # (K, D), exact in bf16

    K = size * levels
    K_pad = _round_up(K, 128)
    tb = min(tb, _round_up(B, 8))
    td = min(td, _round_up(D, 128))
    B_pad = _round_up(B, tb)
    D_pad = _round_up(D, td)

    if (K_pad, D_pad) != (K, D):
        w = jnp.pad(w, ((0, K_pad - K), (0, D_pad - D)))
    if B_pad != B:
        x = jnp.pad(x, ((0, B_pad - B), (0, 0)))

    size_f = float(size)

    def kernel(x_ref, w_ref, o_ref):
        xb = x_ref[...]                                                   # (tb, size) f32
        # value -> nearest level index (torchhd value_to_index + clamp)
        t = jnp.clip((xb - low) * inv_span, 0.0, 1.0)
        idx = jnp.round(t * (levels - 1)).astype(jnp.int32)               # (tb, size)
        # flatten (feature, level) -> row index into the XOR table
        feat_off = jax.lax.broadcasted_iota(jnp.int32, (1, size), 1) * levels
        flat = idx + feat_off                                             # (tb, size)
        # one-hot over K: feature ranges are disjoint, so boolean OR is exact
        k_iota = jax.lax.broadcasted_iota(jnp.int32, (tb, K_pad), 1)
        onehot = flat[:, 0:1] == k_iota
        for f in range(1, size):                                          # tiny static unroll
            onehot = onehot | (flat[:, f:f + 1] == k_iota)
        onehot = onehot.astype(jnp.bfloat16)                              # exact {0,1}
        # popcount of XOR(position, level) over features == one bf16 MXU matmul
        counts = jnp.dot(onehot, w_ref[...], preferred_element_type=jnp.float32)
        # BSC multiset = majority vote over the `size` bound hypervectors.
        # TODO(synk): torchhd breaks exact ties (count == size/2) randomly; ties resolve to 0 here.
        o_ref[...] = (2.0 * counts > size_f).astype(o_ref.dtype)

    n_d = D_pad // td
    n_b = B_pad // tb
    out = pl.pallas_call(
        kernel,
        out_shape=jax.ShapeDtypeStruct((B_pad, D_pad), jnp.int32),
        # D axis outer, batch inner: the (K_pad, td) XOR-table block index only
        # depends on the outer axis, so it is NOT re-DMA'd across the inner batch loop.
        grid=(n_d, n_b),
        in_specs=[
            pl.BlockSpec((tb, size), lambda d, b: (b, 0)),
            pl.BlockSpec((K_pad, td), lambda d, b: (0, d)),
        ],
        out_specs=pl.BlockSpec((tb, td), lambda d, b: (b, d)),
        compiler_params=pltpu.CompilerParams(
            dimension_semantics=("parallel", "parallel"),
        ),
    )(x, w)
    return out[:B, :D].astype(jnp.uint8)


def reference(x, position_hv, level_hv, *, low, high):
    """Pure-JAX reference of RecordEncoder.forward (BSC)."""
    B, size = x.shape
    levels = level_hv.shape[0]
    t = jnp.clip((x - low) * (1.0 / (high - low)), 0.0, 1.0)
    idx = jnp.round(t * (levels - 1)).astype(jnp.int32)        # (B, size)
    value_hv = level_hv[idx]                                    # (B, size, D) gather
    bound = jnp.bitwise_xor(position_hv[None, :, :], value_hv)  # bind (BSC = XOR)
    counts = bound.astype(jnp.int32).sum(axis=1)                # multiset counts
    return (2 * counts > size).astype(jnp.uint8)                # majority vote


if __name__ == "__main__":
    # Iris-like record encoding: 4 input features, 100 quantization levels,
    # 1024-bit hyperdimensional output, batch of 256 records (exercises a 2x2 grid
    # and the table-resident inner batch loop).
    B, size, D, levels = 256, 4, 1024, 100
    low, high = 0.0, 8.0

    key = jax.random.PRNGKey(0)
    kx, kp, kl = jax.random.split(key, 3)
    x = jax.random.uniform(kx, (B, size), jnp.float32, minval=low, maxval=high)
    # embeddings.Random(size, D, vsa='BSC'): i.i.d. Bernoulli(0.5) bit hypervectors.
    position_hv = jax.random.bernoulli(kp, 0.5, (size, D)).astype(jnp.uint8)
    # TODO(synk): ScatterCode's correlated level-HV init (progressive random bit flips
    # between adjacent levels) is host-side parameter init, not part of the forward
    # pass; i.i.d. random level hypervectors are used here.
    level_hv = jax.random.bernoulli(kl, 0.5, (levels, D)).astype(jnp.uint8)

    out = record_encoder(x, position_hv, level_hv, low=low, high=high)
    out = jax.block_until_ready(out)

    ref = reference(x, position_hv, level_hv, low=low, high=high)
    assert out.shape == (B, D) and out.dtype == jnp.uint8
    assert bool(jnp.array_equal(out, ref))

    print("KERNEL_OK")
</pallas_src>

<mosaic_0001>
module attributes {stable_mosaic.version = 11 : i64} {
  func.func @kernel(%arg0: i32, %arg1: i32, %arg2: memref<128x4xf32, #tpu.memory_space<vmem>>, %arg3: memref<512x512xbf16, #tpu.memory_space<vmem>>, %arg4: memref<128x512xi32, #tpu.memory_space<vmem>>) attributes {dimension_semantics = [#tpu.dimension_semantics<parallel>, #tpu.dimension_semantics<parallel>], iteration_bounds = array<i64: 2, 2>, scalar_prefetch = 0 : i64, scratch_operands = 0 : i64, tpu.core_type = #tpu.core_type<tc>, window_params = [{transform_indices = @transform_0, window_bounds = array<i64: 128, 4>}, {transform_indices = @transform_1, window_bounds = array<i64: 512, 512>}, {transform_indices = @transform_2, window_bounds = array<i64: 128, 512>}]} {
    %c0 = arith.constant 0 : index
    %c0_0 = arith.constant 0 : index
    %0 = vector.load %arg2[%c0, %c0_0] : memref<128x4xf32, #tpu.memory_space<vmem>>, vector<128x4xf32>
    %cst = arith.constant 0.000000e+00 : f32
    %1 = vector.broadcast %cst : f32 to vector<128x4xf32>
    %2 = arith.subf %0, %1 : vector<128x4xf32>
    %cst_1 = arith.constant 1.250000e-01 : f32
    %3 = vector.broadcast %cst_1 : f32 to vector<128x4xf32>
    %4 = arith.mulf %2, %3 : vector<128x4xf32>
    %cst_2 = arith.constant 0.000000e+00 : f32
    %cst_3 = arith.constant 1.000000e+00 : f32
    %5 = vector.broadcast %cst_2 : f32 to vector<128x4xf32>
    %6 = arith.maximumf %5, %4 : vector<128x4xf32>
    %7 = vector.broadcast %cst_3 : f32 to vector<128x4xf32>
    %8 = arith.minimumf %7, %6 : vector<128x4xf32>
    %cst_4 = arith.constant 9.900000e+01 : f32
    %9 = vector.broadcast %cst_4 : f32 to vector<128x4xf32>
    %10 = arith.mulf %8, %9 : vector<128x4xf32>
    %11 = math.roundeven %10 : vector<128x4xf32>
    %12 = arith.fptosi %11 : vector<128x4xf32> to vector<128x4xi32>
    %13 = tpu.iota {dimensions = array<i32: 1>} : vector<1x4xi32>
    %c100_i32 = arith.constant 100 : i32
    %14 = vector.broadcast %c100_i32 : i32 to vector<1x4xi32>
    %15 = arith.muli %13, %14 : vector<1x4xi32>
    %16 = vector.broadcast %15 : vector<1x4xi32> to vector<128x4xi32>
    %17 = arith.addi %12, %16 : vector<128x4xi32>
    %18 = tpu.iota {dimensions = array<i32: 1>} : vector<128x512xi32>
    %19 = vector.extract_strided_slice %17 {offsets = [0, 0], sizes = [128, 1], strides = [1, 1]} : vector<128x4xi32> to vector<128x1xi32>
    %20 = vector.broadcast %19 : vector<128x1xi32> to vector<128x512xi32>
    %21 = arith.cmpi eq, %20, %18 : vector<128x512xi32>
    %22 = vector.extract_strided_slice %17 {offsets = [0, 1], sizes = [128, 1], strides = [1, 1]} : vector<128x4xi32> to vector<128x1xi32>
    %23 = vector.broadcast %22 : vector<128x1xi32> to vector<128x512xi32>
    %24 = arith.cmpi eq, %23, %18 : vector<128x512xi32>
    %25 = arith.ori %21, %24 : vector<128x512xi1>
    %26 = vector.extract_strided_slice %17 {offsets = [0, 2], sizes = [128, 1], strides = [1, 1]} : vector<128x4xi32> to vector<128x1xi32>
    %27 = vector.broadcast %26 : vector<128x1xi32> to vector<128x512xi32>
    %28 = arith.cmpi eq, %27, %18 : vector<128x512xi32>
    %29 = arith.ori %25, %28 : vector<128x512xi1>
    %30 = vector.extract_strided_slice %17 {offsets = [0, 3], sizes = [128, 1], strides = [1, 1]} : vector<128x4xi32> to vector<128x1xi32>
    %31 = vector.broadcast %30 : vector<128x1xi32> to vector<128x512xi32>
    %32 = arith.cmpi eq, %31, %18 : vector<128x512xi32>
    %33 = arith.ori %29, %32 : vector<128x512xi1>
    %34 = arith.extui %33 : vector<128x512xi1> to vector<128x512xi32>
    %35 = arith.sitofp %34 : vector<128x512xi32> to vector<128x512xf32>
    %36 = arith.truncf %35 : vector<128x512xf32> to vector<128x512xbf16>
    %c0_5 = arith.constant 0 : index
    %c0_6 = arith.constant 0 : index
    %37 = vector.load %arg3[%c0_5, %c0_6] : memref<512x512xbf16, #tpu.memory_space<vmem>>, vector<512x512xbf16>
    %cst_7 = arith.constant dense<0.000000e+00> : vector<128x512xf32>
    %38 = tpu.matmul %36, %37, %cst_7 {dimension_numbers = #tpu.dot_dimension_numbers<[1], [0], [0], [1], [0, 0, 1, 1], [], []>} : vector<128x512xbf16>, vector<512x512xbf16>, vector<128x512xf32> -> vector<128x512xf32>
    %cst_8 = arith.constant 2.000000e+00 : f32
    %39 = vector.broadcast %cst_8 : f32 to vector<128x512xf32>
    %40 = arith.mulf %39, %38 : vector<128x512xf32>
    %cst_9 = arith.constant 4.000000e+00 : f32
    %41 = vector.broadcast %cst_9 : f32 to vector<128x512xf32>
    %42 = arith.cmpf ogt, %40, %41 : vector<128x512xf32>
    %43 = arith.extui %42 : vector<128x512xi1> to vector<128x512xi32>
    %c0_10 = arith.constant 0 : index
    %c0_11 = arith.constant 0 : index
    %44 = vector.load %arg4[%c0_10, %c0_11] : memref<128x512xi32, #tpu.memory_space<vmem>>, vector<128x512xi32>
    tpu.vector_store %arg4[%c0_10, %c0_11], %43 {strides = array<i32>} : memref<128x512xi32, #tpu.memory_space<vmem>>, vector<128x512xi32>,
    return
  }
  func.func @transform_0(%arg0: i32, %arg1: i32) -> (i32, i32) {
    %c0_i32 = arith.constant 0 : i32
    %c0_i32_0 = arith.constant 0 : i32
    return %arg1, %c0_i32 : i32, i32
  }
  func.func @transform_1(%arg0: i32, %arg1: i32) -> (i32, i32) {
    %c0_i32 = arith.constant 0 : i32
    %c0_i32_0 = arith.constant 0 : i32
    return %c0_i32, %arg0 : i32, i32
  }
  func.func @transform_2(%arg0: i32, %arg1: i32) -> (i32, i32) {
    %c0_i32 = arith.constant 0 : i32
    return %arg1, %arg0 : i32, i32
  }
}

</mosaic_0001>

<bundles_post_ra>
// kernel: tpu_custom_call.1
= control target key start
LH: loop header
LB: loop body
LE: loop exit
PB: predicated region body
PF: predicated region fallthrough
CT: control target
= control target key end

     0   :  { %s5893_s0 = inlined_call_operand.vmem [shape: f32[256,4], index: 0, kind: input, shape index: {}]   ;;  %s5894_s1 = inlined_call_operand.hbm [shape: bf16[512,1024], index: 1, kind: input, shape index: {}]   ;;  %s5895_s2 = inlined_call_operand.hbm [shape: s32[256,1024], index: 2, kind: output, shape index: {}]  }
   0x1   :  { %5947 = sst [smem:[#allocation8_spill]] %s5894_s1 }
   0x2   :  { %7 = vsyncpa [#allocation3], 0 }
   0x3   :  { %9 = vsyncpa [#allocation3 + $0x1], 0 }
   0x4   :  { %10 = vsyncpa [#allocation4], 0 }
   0x5   :  { %12 = vsyncpa [#allocation4 + $0x1], 0  ;;  %s3691_s9 = smov 0   ;;  %s3693_s10 = smov 0  }
   0x6   :  { %s3695_s11 = smov 0   ;;  %s3697_s12 = smov 0  }
   0x7   :  { %s3699_s13 = smov 0   ;;  %s3701_s14 = smov 0  }
   0x8   :  { %s3703_s15 = smov 0   ;;  %s3705_s16 = smov 0  }
   0x9   :  { %s3707_s17 = smov 0   ;;  %s3709_s18 = smov 0  }
   0xa   :  { %s3711_s19 = smov 0  }
   0xb LB: > { %s2711_s20 = sadd.s32 4294967295, %s3661_s19   ;;  %s2712_s21 = sadd.s32 4294967294, %s3661_s19   ;;  %s3661_s19 = sphi %s3711_s19, %s18_s19   ;;  %s3657_s18 = sphi %s3709_s18, %s6225_s18   ;;  %s3653_s17 = sphi %s3707_s17, %s6224_s17   ;;  %s3649_s16 = sphi %s3705_s16, %s6223_s16   ;;  %s3645_s15 = sphi %s3703_s15, %s6222_s15   ;;  %s3641_s14 = sphi %s3701_s14, %s6221_s14   ;;  %s3637_s13 = sphi %s3699_s13, %s6220_s13   ;;  %s3633_s12 = sphi %s3697_s12, %s6219_s12   ;;  %s3629_s11 = sphi %s3695_s11, %s6218_s11   ;;  %s3625_s10 = sphi %s3693_s10, %s6217_s10   ;;  %s3621_s9 = sphi %s3691_s9, %s6216_s9  }
   0xc   : > { %s27_s22 = sadd.s32 1, %s3653_s17  ;;  %s30_s23 = sadd.s32 1, %s3657_s18 }
   0xd   : > { %p28_p0 = scmp.ge.s32.totalorder %s27_s22, 2  ;;  %s63_s24 = sadd.s32 1, %s3641_s14 }
   0xe   : > { %p70_p1 = scmp.ne.s32.totalorder %s3641_s14, %s3637_s13  ;;  %p71_p2 = scmp.eq.s32.totalorder %s3661_s19, 0 }
   0xf   : > { %s6227_s22 = smov (%p28_p0, %s27_s22), 0  ;;  %s6229_s23 = smov (!%p28_p0, %s30_s23), %s3657_s18 }
  0x10   : > { %p3755_p3 = por %p71_p2, %p70_p1  ;;  %p76_p4 = scmp.ne.s32.totalorder %s3637_s13, %s3633_s12 }
  0x11   : > { %p32_p5 = scmp.ge.s32.totalorder %s6229_s23, 2  ;;  %p77_p6 = scmp.eq.s32.totalorder %s2711_s20, 0 }
  0x12   : > { %s86_s26 = ssub.s32 %s3653_s17, %s6227_s22  ;;  %s91_s27 = sadd.s32 1, %s3629_s11 }
  0x13   : > { %s6231_s23 = smov (%p32_p5, %s6229_s23), 0  ;;  %p3765_p7 = por %p77_p6, %p76_p4 }
  0x14   : > { %p101_p8 = scmp.ne.s32.totalorder %s3629_s11, %s3625_s10  ;;  %s60_s29 = ssub.s32 %s3657_s18, %s6231_s23 }
  0x15   : > { %p102_p9 = scmp.eq.s32.totalorder %s2711_s20, 3  ;;  %p61_p10 = scmp.eq.s32.totalorder %s60_s29, 0 }
  0x16   : > { %s88_s30 = sor.u32 %s86_s26, %s60_s29  ;;  %p107_p13 = scmp.ne.s32.totalorder %s3625_s10, %s3621_s9 }
  0x17   : > { %p89_p11 = scmp.eq.s32.totalorder %s88_s30, 0  ;;  %p3773_p12 = por %p102_p9, %p101_p8 }
  0x18   : > { %s3778_s4 = scalar_select %p61_p10, %s3641_s14, %s63_s24  }
  0x19   : > { %s5950_s3 = scalar_select %p3773_p12, 1, 0 }
  0x1a   : > { %s3781_s5 = scalar_select %p89_p11, %s3629_s11, %s91_s27  }
  0x1b   : > { %p108_p0 = scmp.eq.s32.totalorder %s2712_s21, 3  ;;  %p3176_p1 = scmp.lt.s32.totalorder %s3661_s19, 4 }
  0x1c   : > { %s137_s7 = sand.u32 1, %s3641_s14   ;;  %s3050_s12 = sshll.u32 %s3657_s18, 8 }
  0x1d   : > { %p3786_p2 = por %p108_p0, %p107_p13  ;;  %s2715_s8 = sshll.u32 %s137_s7, 10 }
  0x1e   : > { %s5952_s1 = sld [smem:[#allocation8_spill]]  ;;  %s141_s24 = scalar_lea.vmem [#allocation2], %s2715_s8 }
  0x1f   : > { %s5951_s6 = scalar_select %p3786_p2, 1, 0 }
  0x20   : > { %s148_s27 = sshll.u32 %s141_s24, 4  ;;  %p3801_p4 = pnand %p3176_p1, %p3755_p3  ;;  %s3797_s27 = int_to_ptr.vmem [resolvable:$true] %s148_s27 }
  0x21   : > { %s3805_s30 = scalar_lea.sflag [#allocation3], %s137_s7 }
  0x22   : > { %p3511_p6 = pneg %p3801_p4 }
  0x24   : > { %s3795_s29 = scalar_lea.hbm %s5952_s1, %s3050_s12  ;;  %s3514_s25 = scalar_lea.hbm %s5952_s1, 32768 }
  0x25   : > { %s3509_s20 = scalar_lea.hbm %s3795_s29, 16384  ;;  %p3515_p3 = scmp.lt.u32.totalorder %s3795_s29, %s5952_s1 }
  0x26   : > { %p3510_p5 = scmp.ne.s32.totalorder %s3795_s29, %s3509_s20  ;;  %p3516_p10 = scmp.lt.u32.totalorder %s3514_s25, %s3509_s20 }
  0x27   : > { %p3518_p13 = scmp.lt.u32.totalorder %s3509_s20, %s3795_s29 }
  0x28   : > { %p3512_p8 = pnand %p3511_p6, %p3510_p5  ;;  %p3517_p11 = por %p3516_p10, %p3515_p3 }
  0x2a   : > { %p3513_p9 = pneg %p3512_p8  ;;  %p3519_p0 = por %p3518_p13, %p3517_p11 }
  0x2c   : > { %p3520_p1 = pnand %p3519_p0, %p3513_p9 }
  0x2e   : > { %3523 = shalt.err (!%p3520_p1)
}
  0x2f   : > { %s3524_s7 = scalar_lea.vmem %s3797_s27, 16384  ;;  %s3663_s8 = smov [#allocation2]  }
  0x30   : > { %p3525_p5 = scmp.ne.s32.totalorder %s3797_s27, %s3524_s7  ;;  %s3529_s12 = sshll.u32 %s3663_s8, 4  ;;  %s3530_s12 = int_to_ptr.vmem [resolvable:$false] %s3529_s12 }
  0x31   : > { %s3531_s26 = scalar_lea.vmem %s3530_s12, 32768  ;;  %p3532_p12 = scmp.lt.s32.totalorder %s3797_s27, %s3530_s12 }
  0x32   : > { %p3527_p8 = pnand %p3525_p5, %p3511_p6  ;;  %p3533_p3 = scmp.lt.s32.totalorder %s3531_s26, %s3524_s7 }
  0x34   : > { %p3528_p2 = pneg %p3527_p8  ;;  %p3534_p10 = por %p3533_p3, %p3532_p12 }
  0x36   : > { %p3535_p11 = pnand %p3534_p10, %p3528_p2 }
  0x38   : > { %3538 = shalt.err (!%p3535_p11)
}
  0x39   : > { %s3664_s20 = smov 512   ;;  %s3665_s25 = smov 256  }
  0x3a   : > { %s3666_s24 = smov 16   ;;  %p2718_p6 = scmp.ge.s32.totalorder %s3661_s19, 1 }
  0x3b   : > { %3171 = dma.hbm_to_vmem [thread:$0]  (!%p3801_p4), %s3795_s29, 16384, %s3797_s27, %s3805_s30, %s3664_s20, %s3665_s25, %s3666_s24  }
  0x3c   : > { %p156_p9 = scmp.lt.s32.totalorder %s3661_s19, 5 }
  0x3e   : > { %p157_p13 = pnand %p2718_p6, %p156_p9 }
  0x3f   : > { %s162_s7 = sand.u32 (!%p157_p13), 1, %s3637_s13  }
  0x40   : > { %160 = sbr.rel (%p157_p13) target bundleno = 742 (0x2e6), region = 28  ;;  %s2719_s8 = sshll.u32 (!%p157_p13), %s162_s7, 10 }
  0x41   : > { %s163_s12 = scalar_lea.sflag (!%p157_p13), [#allocation3], %s162_s7  ;;  %s3836_s26 = scalar_lea.vmem (!%p157_p13), [#allocation2], %s2719_s8 }
  0x47   : > { %3612 = dma.done.wait (%p3765_p7), %s163_s12, 16384  }
  0x48   : > { %3614 = vsyncadd (%p3765_p7), %s163_s12, 4294950912  ;;  %s2721_s1 = sshll.u32 %s3645_s15, 4  ;;  %v3667_v0 = vmov 2   ;;  %v3668_v1 = vmov 1   ;;  %v297_v2 = vlaneseq  ;;  %v3317_v22 = vld [vmem:[%s3836_s26 + $0x4] ss:$16 sps:$4 sm:$0xff]  }
  0x49   : > { %3278 = vset.pattern.permute.xlu0 %v3667_v0  ;;  %3277 = vset.pattern.permute.xlu1 %v3668_v1  ;;  %p193_p12 = scmp.lt.s32.totalorder %s2721_s1, 31  ;;  %v3319_v30 = vld [vmem:[%s3836_s26 + $0xc] ss:$16 sps:$4 sm:$0xff]   ;;  %v3321_v36 = vld [vmem:[%s3836_s26] ss:$16 sps:$4 sm:$0xff]   ;;  %s3045_s25 = sshll.u32 %s3649_s16, 2 }
  0x4a   : > { %v3855_v13 = vand.u32 127, %v297_v2  ;;  %1887 = vmatprep.subr.bf16.mxu0 %v3317_v22  ;;  %v3322_v37 = vld [vmem:[%s3836_s26 + $0x8] ss:$16 sps:$4 sm:$0xff]   ;;  %2113 = vmatprep.subr.bf16.mxu1 %v3319_v30  ;;  %v3323_v39 = vld [vmem:[%s3836_s26 + $0x24] ss:$16 sps:$4 sm:$0xff]   ;;  %s3051_s24 = sshll.u32 %s3645_s15, 7 }
  0x4b   : > { %s6233_s1 = smov (!%p193_p12, %s2721_s1), 31  ;;  %1888 = vmatpush1.bf16.msra.mxu0 %v3321_v36  ;;  %2114 = vmatpush1.bf16.msra.mxu1 %v3322_v37  ;;  %v3325_v41 = vld [vmem:[%s3836_s26 + $0x2c] ss:$16 sps:$4 sm:$0xff]   ;;  %v3327_v42 = vld [vmem:[%s3836_s26 + $0x20] ss:$16 sps:$4 sm:$0xff]   ;;  %s5801_s7 = sadd.s32 %s3051_s24, %s3045_s25 }
  0x4c   : > { %s2722_s29 = sshll.u32 %s6233_s1, 3  ;;  %v3860_v24 = vmul.u32 100, %v3855_v13  ;;  %1889 = vmatprep.subr.bf16.mxu0 %v3323_v39  ;;  %v3328_v45 = vld [vmem:[%s3836_s26 + $0x28] ss:$16 sps:$4 sm:$0xff]   ;;  %v3329_v51 = vld [vmem:[%s3836_s26 + $0x44] ss:$16 sps:$4 sm:$0xff]   ;;  %2115 = vmatprep.subr.bf16.mxu1 %v3325_v41 }
  0x4d   : > { %s3848_s30 = scalar_lea.vmem %s5893_s0, %s2722_s29  ;;  %v3331_v54 = vld [vmem:[%s3836_s26 + $0x4c] ss:$16 sps:$4 sm:$0xff]   ;;  %v3333_v56 = vld [vmem:[%s3836_s26 + $0x40] ss:$16 sps:$4 sm:$0xff]   ;;  %v3334_v59 = vld [vmem:[%s3836_s26 + $0x48] ss:$16 sps:$4 sm:$0xff]  }
  0x4e   : > { %v201_v3 = vld [vmem:[%s3848_s30] sm:$0xff]  ;;  %v204_v4 = vld [vmem:[%s3848_s30 + $0x18] sm:$0xff]  ;;  %v202_v5 = vld [vmem:[%s3848_s30 + $0x8] sm:$0xff]  ;;  %s189_s1 = sand.u32 1, %s3625_s10   ;;  %s3047_s16 = sshll.u32 %s5801_s7, 7 }
  0x4f   : > { %v217_v6 = vmul.f32 0.125, %v201_v3  ;;  %v220_v7 = vmul.f32 0.125, %v204_v4  ;;  %v218_v8 = vmul.f32 0.125, %v202_v5  ;;  %v205_v9 = vld [vmem:[%s3848_s30 + $0x20] sm:$0xff]  ;;  %v208_v11 = vld [vmem:[%s3848_s30 + $0x38] sm:$0xff]  ;;  %v203_v16 = vld [vmem:[%s3848_s30 + $0x10] sm:$0xff]  ;;  %1890 = vmatpush1.bf16.msra.mxu0 %v3327_v42  ;;  %2116 = vmatpush1.bf16.msra.mxu1 %v3328_v45 }
  0x50   : > { %v221_v10 = vmul.f32 0.125, %v205_v9  ;;  %v224_v20 = vmul.f32 0.125, %v208_v11  ;;  %v219_v27 = vmul.f32 0.125, %v203_v16  ;;  %v206_v28 = vld [vmem:[%s3848_s30 + $0x28] sm:$0xff]  ;;  %v207_v29 = vld [vmem:[%s3848_s30 + $0x30] sm:$0xff]  ;;  %v209_v49 = vld [vmem:[%s3848_s30 + $0x40] sm:$0xff]  ;;  %1891 = vmatprep.subr.bf16.mxu0 %v3329_v51  ;;  %2117 = vmatprep.subr.bf16.mxu1 %v3331_v54 }
  0x51   : > { %v233_v12 = vmax.f32 %v217_v6, 0.0  ;;  %v236_v14 = vmax.f32 %v220_v7, 0.0  ;;  %v234_v15 = vmax.f32 %v218_v8, 0.0  ;;  %v210_v35 = vld [vmem:[%s3848_s30 + $0x48] sm:$0xff]  ;;  %v222_v44 = vmul.f32 0.125, %v206_v28  ;;  %v212_v6 = vld [vmem:[%s3848_s30 + $0x58] sm:$0xff] }
  0x52   : > { %v237_v21 = vmax.f32 %v221_v10, 0.0  ;;  %v240_v34 = vmax.f32 %v224_v20, 0.0  ;;  %v235_v43 = vmax.f32 %v219_v27, 0.0  ;;  %v223_v50 = vmul.f32 0.125, %v207_v29  ;;  %v3335_v60 = vld [vmem:[%s3836_s26 + $0x64] ss:$16 sps:$4 sm:$0xff]  }
  0x53   : > { %v249_v17 = vmin.f32 %v233_v12, 1.0  ;;  %v252_v18 = vmin.f32 %v236_v14, 1.0  ;;  %v250_v19 = vmin.f32 %v234_v15, 1.0  ;;  %v226_v53 = vmul.f32 0.125, %v210_v35  ;;  %v3337_v5 = vld [vmem:[%s3836_s26 + $0x6c] ss:$16 sps:$4 sm:$0xff]   ;;  %1892 = vmatpush1.bf16.msra.mxu0 %v3333_v56  ;;  %2118 = vmatpush1.bf16.msra.mxu1 %v3334_v59 }
  0x54   : > { %v253_v38 = vmin.f32 %v237_v21, 1.0  ;;  %v256_v48 = vmin.f32 %v240_v34, 1.0  ;;  %v239_v55 = vmax.f32 %v223_v50, 0.0  ;;  %v251_v57 = vmin.f32 %v235_v43, 1.0  ;;  %v3339_v8 = vld [vmem:[%s3836_s26 + $0x60] ss:$16 sps:$4 sm:$0xff]   ;;  %1893 = vmatprep.subr.bf16.mxu0 %v3335_v60  ;;  %2119 = vmatprep.subr.bf16.mxu1 %v3337_v5 }
  0x55   : > { %v265_v23 = vmul.f32 99.0, %v249_v17  ;;  %v268_v25 = vmul.f32 99.0, %v252_v18  ;;  %v266_v26 = vmul.f32 99.0, %v250_v19  ;;  %v242_v58 = vmax.f32 %v226_v53, 0.0  ;;  %v3340_v9 = vld [vmem:[%s3836_s26 + $0x68] ss:$16 sps:$4 sm:$0xff]  }
  0x56   : > { %v269_v52 = vmul.f32 99.0, %v253_v38  ;;  %v238_v61 = vmax.f32 %v222_v44, 0.0  ;;  %v225_v62 = vmul.f32 0.125, %v209_v49  ;;  %v255_v63 = vmin.f32 %v239_v55, 1.0  ;;  %v3341_v12 = vld [vmem:[%s3836_s26 + $0x84] ss:$16 sps:$4 sm:$0xff]  }
  0x57   : > { %v3118_v31 = vcvt.f32.s32 %v265_v23  ;;  %v3127_v32 = vcvt.f32.s32 %v268_v25  ;;  %v3121_v33 = vcvt.f32.s32 %v266_v26  ;;  %v272_v3 = vmul.f32 99.0, %v256_v48  ;;  %v3343_v18 = vld [vmem:[%s3836_s26 + $0x8c] ss:$16 sps:$4 sm:$0xff]   ;;  %v213_v23 = vld [vmem:[%s3848_s30 + $0x60] sm:$0xff]  ;;  %1894 = vmatpush1.bf16.msra.mxu0 %v3339_v8  ;;  %2120 = vmatpush1.bf16.msra.mxu1 %v3340_v9  ;;  %v3346_v28 = vld [vmem:[%s3836_s26 + $0x88] ss:$16 sps:$4 sm:$0xff]  }
  0x58   : > { %v3130_v2 = vcvt.f32.s32 %v269_v52  ;;  %v258_v4 = vmin.f32 %v242_v58, 1.0  ;;  %v271_v7 = vmul.f32 99.0, %v255_v63  ;;  %v267_v10 = vmul.f32 99.0, %v251_v57  ;;  %v3345_v25 = vld [vmem:[%s3836_s26 + $0x80] ss:$16 sps:$4 sm:$0xff]   ;;  %1895 = vmatprep.subr.bf16.mxu0 %v3341_v12  ;;  %2121 = vmatprep.subr.bf16.mxu1 %v3343_v18  ;;  %v214_v9 = vld [vmem:[%s3848_s30 + $0x68] sm:$0xff] }
  0x59   : > { %v3870_v40 = vadd.s32 %v3118_v31, %v3860_v24  ;;  %v3878_v46 = vadd.s32 %v3127_v32, %v3860_v24  ;;  %v3881_v47 = vadd.s32 %v3121_v33, %v3860_v24  ;;  %v3669_v14 = vmov 3   ;;  %v3347_v31 = vld [vmem:[%s3836_s26 + $0xa4] ss:$16 sps:$4 sm:$0xff]   ;;  %v3349_v33 = vld [vmem:[%s3836_s26 + $0xac] ss:$16 sps:$4 sm:$0xff]   ;;  %s2720_s28 = sshll.u32 %s189_s1, 9 }
  0x5a   : > { %v274_v11 = vmul.f32 99.0, %v258_v4  ;;  %v254_v15 = vmin.f32 %v238_v61, 1.0  ;;  %v241_v16 = vmax.f32 %v225_v62, 0.0  ;;  %v3136_v17 = vcvt.f32.s32 %v271_v7  ;;  %v3351_v39 = vld [vmem:[%s3836_s26 + $0xa0] ss:$16 sps:$4 sm:$0xff]   ;;  %s5689_s20 = scalar_lea.vmem [#allocation5], %s2720_s28 }
  0x5b   : > { %608 = vperm.xlu0 %3278, %v3870_v40   ;;  %432 = vperm.xlu1 %3277, %v3870_v40   ;;  %v3902_v19 = vadd.s32 %v3130_v2, %v3860_v24  ;;  %v3139_v20 = vcvt.f32.s32 %v272_v3  ;;  %v228_v21 = vmul.f32 0.125, %v212_v6  ;;  %v229_v27 = vmul.f32 0.125, %v213_v23  ;;  %v3352_v41 = vld [vmem:[%s3836_s26 + $0xa8] ss:$16 sps:$4 sm:$0xff]   ;;  %v3353_v43 = vld [vmem:[%s3836_s26 + $0xc4] ss:$16 sps:$4 sm:$0xff]  }
  0x5c   : > { %v3145_v22 = vcvt.f32.s32 %v274_v11  ;;  %v3907_v26 = vadd.s32 %v3136_v17, %v3860_v24  ;;  %v3124_v29 = vcvt.f32.s32 %v267_v10  ;;  %v270_v35 = vmul.f32 99.0, %v254_v15  ;;  %1896 = vmatpush1.bf16.msra.mxu0 %v3345_v25  ;;  %2122 = vmatpush1.bf16.msra.mxu1 %v3346_v28  ;;  %v3355_v45 = vld [vmem:[%s3836_s26 + $0xcc] ss:$16 sps:$4 sm:$0xff]   ;;  %v3357_v53 = vld [vmem:[%s3836_s26 + $0xc0] ss:$16 sps:$4 sm:$0xff]   ;;  %s2612_s15 = sshll.u32 %s5689_s20, 4  ;;  %s5817_s15 = int_to_ptr.vmem [resolvable:$true] %s2612_s15 }
  0x5d   : > { %v245_v32 = vmax.f32 %v229_v27, 0.0  ;;  %v3918_v34 = vadd.s32 %v3139_v20, %v3860_v24  ;;  %v257_v36 = vmin.f32 %v241_v16, 1.0  ;;  %v244_v37 = vmax.f32 %v228_v21, 0.0  ;;  %1897 = vmatprep.subr.bf16.mxu0 %v3347_v31  ;;  %2123 = vmatprep.subr.bf16.mxu1 %v3349_v33  ;;  %v3358_v54 = vld [vmem:[%s3836_s26 + $0xc8] ss:$16 sps:$4 sm:$0xff]   ;;  %v211_v2 = vld [vmem:[%s3848_s30 + $0x50] sm:$0xff] }
  0x5e   : > { %v3911_v30 = vadd.s32 %v3145_v22, %v3860_v24  ;;  %v3924_v42 = vadd.s32 %v3124_v29, %v3860_v24  ;;  %v3670_v48 = vmov 0   ;;  %v3133_v49 = vcvt.f32.s32 %v270_v35  ;;  %v3359_v56 = vld [vmem:[%s3836_s26 + $0xe4] ss:$16 sps:$4 sm:$0xff]   ;;  %v3361_v57 = vld [vmem:[%s3836_s26 + $0xec] ss:$16 sps:$4 sm:$0xff]   ;;  %s5832_s29 = scalar_lea.sflag [#allocation4], %s189_s1 }
  0x5f   : > { %617 = vperm.xlu0 %3278, %v3878_v46   ;;  %435 = vperm.xlu1 %3277, %v3881_v47   ;;  %v261_v38 = vmin.f32 %v245_v32, 1.0  ;;  %v273_v50 = vmul.f32 99.0, %v257_v36  ;;  %v260_v51 = vmin.f32 %v244_v37, 1.0  ;;  %v3363_v61 = vld [vmem:[%s3836_s26 + $0xe0] ss:$16 sps:$4 sm:$0xff]   ;;  %v227_v15 = vmul.f32 0.125, %v211_v2 }
  0x60   : > { %1898 = vmatpush1.bf16.msra.mxu0 %v3351_v39  ;;  %2124 = vmatpush1.bf16.msra.mxu1 %v3352_v41  ;;  %v3941_v58 = vadd.s32 %v3133_v49, %v3860_v24  ;;  %v3364_v62 = vld [vmem:[%s3836_s26 + $0xe8] ss:$16 sps:$4 sm:$0xff]   ;;  %v3365_v63 = vld [vmem:[%s3836_s26 + $0x104] ss:$16 sps:$4 sm:$0xff]   ;;  %v3367_v3 = vld [vmem:[%s3836_s26 + $0x10c] ss:$16 sps:$4 sm:$0xff]  }
  0x61   : > { %v277_v44 = vmul.f32 99.0, %v261_v38  ;;  %1899 = vmatprep.subr.bf16.mxu0 %v3353_v43  ;;  %2125 = vmatprep.subr.bf16.mxu1 %v3355_v45  ;;  %v3142_v59 = vcvt.f32.s32 %v273_v50  ;;  %v276_v60 = vmul.f32 99.0, %v260_v51  ;;  %v3369_v4 = vld [vmem:[%s3836_s26 + $0x100] ss:$16 sps:$4 sm:$0xff]   ;;  %v3370_v7 = vld [vmem:[%s3836_s26 + $0x108] ss:$16 sps:$4 sm:$0xff]  }
  0x62   : > { %v3371_v8 = vld [vmem:[%s3836_s26 + $0x124] ss:$16 sps:$4 sm:$0xff]   ;;  %v3373_v10 = vld [vmem:[%s3836_s26 + $0x12c] ss:$16 sps:$4 sm:$0xff]   ;;  %v3375_v11 = vld [vmem:[%s3836_s26 + $0x120] ss:$16 sps:$4 sm:$0xff]  }
  0x63   : > { %3284 = vset.pattern.permute.xlu0 %v3669_v14  ;;  %3279 = vset.pattern.permute.xlu1 %v3667_v0  ;;  %v3154_v52 = vcvt.f32.s32 %v277_v44  ;;  %v3952_v5 = vadd.s32 %v3142_v59, %v3860_v24  ;;  %v3151_v6 = vcvt.f32.s32 %v276_v60  ;;  %v3376_v16 = vld [vmem:[%s3836_s26 + $0x128] ss:$16 sps:$4 sm:$0xff]   ;;  %v3377_v17 = vld [vmem:[%s3836_s26 + $0x144] ss:$16 sps:$4 sm:$0xff]   ;;  %v3379_v18 = vld [vmem:[%s3836_s26 + $0x14c] ss:$16 sps:$4 sm:$0xff]  }
  0x64   : > { %787 = vperm.xlu0 %3284, %v3881_v47   ;;  %611 = vperm.xlu1 %3279, %v3881_v47   ;;  %v230_v20 = vmul.f32 0.125, %v214_v9  ;;  %v243_v21 = vmax.f32 %v227_v15, 0.0  ;;  %v3381_v22 = vld [vmem:[%s3836_s26 + $0x140] ss:$16 sps:$4 sm:$0xff]   ;;  %v3382_v23 = vld [vmem:[%s3836_s26 + $0x148] ss:$16 sps:$4 sm:$0xff]  }
  0x65   : > { %v3934_v55 = vadd.s32 %v3154_v52, %v3860_v24  ;;  %1900 = vmatpush1.bf16.msra.mxu0 %v3357_v53  ;;  %2126 = vmatpush1.bf16.msra.mxu1 %v3358_v54  ;;  %v3963_v12 = vadd.s32 %v3151_v6, %v3860_v24  ;;  %v215_v25 = vld [vmem:[%s3848_s30 + $0x70] sm:$0xff]  ;;  %v3385_v29 = vld [vmem:[%s3836_s26 + $0x16c] ss:$16 sps:$4 sm:$0xff]   ;;  %v3388_v38 = vld [vmem:[%s3836_s26 + $0x168] ss:$16 sps:$4 sm:$0xff]   ;;  %s3539_s27 = scalar_lea.vmem %s5817_s15, 8192 }
  0x66   : > { %1901 = vmatprep.subr.bf16.mxu0 %v3359_v56  ;;  %2127 = vmatprep.subr.bf16.mxu1 %v3361_v57  ;;  %v231_v27 = vmul.f32 0.125, %v215_v25  ;;  %v3383_v28 = vld [vmem:[%s3836_s26 + $0x164] ss:$16 sps:$4 sm:$0xff]   ;;  %v216_v32 = vld [vmem:[%s3848_s30 + $0x78] sm:$0xff]  ;;  %v259_v33 = vmin.f32 %v243_v21, 1.0  ;;  %v246_v35 = vmax.f32 %v230_v20, 0.0  ;;  %p3540_p7 = scmp.ne.s32.totalorder %s5817_s15, %s3539_s27 }
  0x67   : > { %v232_v36 = vmul.f32 0.125, %v216_v32  ;;  %v3387_v37 = vld [vmem:[%s3836_s26 + $0x160] ss:$16 sps:$4 sm:$0xff]   ;;  %v3389_v41 = vld [vmem:[%s3836_s26 + $0x184] ss:$16 sps:$4 sm:$0xff]   ;;  %p6214_p2 = scmp.ne.s32.totalorder %s5950_s3, 0 }
  0x68   : > { %796 = vperm.xlu0 %3284, %v3902_v19   ;;  %3280 = vset.pattern.permute.xlu1 %v3669_v14  ;;  %v247_v31 = vmax.f32 %v231_v27, 0.0  ;;  %v3391_v43 = vld [vmem:[%s3836_s26 + $0x18c] ss:$16 sps:$4 sm:$0xff]   ;;  %v262_v45 = vmin.f32 %v246_v35, 1.0  ;;  %v275_v49 = vmul.f32 99.0, %v259_v33  ;;  %s3672_s21 = smov [#allocation5]  }
  0x69   : > { %784 = vperm.xlu1 %3280, %v3870_v40   ;;  %1902 = vmatpush1.bf16.msra.mxu0 %v3363_v61  ;;  %v248_v44 = vmax.f32 %v232_v36, 0.0  ;;  %v3393_v50 = vld [vmem:[%s3836_s26 + $0x180] ss:$16 sps:$4 sm:$0xff]   ;;  %v3394_v51 = vld [vmem:[%s3836_s26 + $0x188] ss:$16 sps:$4 sm:$0xff]   ;;  %v4134_v36 = vadd.s32 128, %v3855_v13  ;;  %p3541_p4 = pnand %p3540_p7, %p6214_p2 }
  0x6a   : > { %2128 = vmatpush1.bf16.msra.mxu1 %v3364_v62  ;;  %1903 = vmatprep.subr.bf16.mxu0 %v3365_v63  ;;  %v263_v39 = vmin.f32 %v247_v31, 1.0  ;;  %v3395_v53 = vld [vmem:[%s3836_s26 + $0x1a4] ss:$16 sps:$4 sm:$0xff]   ;;  %v3397_v54 = vld [vmem:[%s3836_s26 + $0x1ac] ss:$16 sps:$4 sm:$0xff]   ;;  %v3148_v59 = vcvt.f32.s32 %v275_v49  ;;  %v278_v60 = vmul.f32 99.0, %v262_v45 }
  0x6b   : > { %2129 = vmatprep.subr.bf16.mxu1 %v3367_v3  ;;  %v3400_v61 = vld [vmem:[%s3836_s26 + $0x1a8] ss:$16 sps:$4 sm:$0xff]   ;;  %v3401_v62 = vld [vmem:[%s3836_s26 + $0x1c4] ss:$16 sps:$4 sm:$0xff]   ;;  %v3403_v63 = vld [vmem:[%s3836_s26 + $0x1cc] ss:$16 sps:$4 sm:$0xff]   ;;  %p3542_p0 = pneg %p3541_p4 }
  0x6c   : > { %805 = vperm.xlu0 %3284, %v3918_v34   ;;  %v3405_v3 = vld [vmem:[%s3836_s26 + $0x1c0] ss:$16 sps:$4 sm:$0xff]   ;;  %v3157_v6 = vcvt.f32.s32 %v278_v60  ;;  %v3409_v9 = vld [vmem:[%s3836_s26 + $0x1ec] ss:$16 sps:$4 sm:$0xff]   ;;  %v3412_v15 = vld [vmem:[%s3836_s26 + $0x1e8] ss:$16 sps:$4 sm:$0xff]  }
  0x6d   : > { %3281 = vset.pattern.permute.xlu1 %v3670_v48  ;;  %1904 = vmatpush1.bf16.msra.mxu0 %v3369_v4  ;;  %v4008_v4 = vadd.s32 %v3148_v59, %v3860_v24  ;;  %v3439_v49 = vld [vmem:[%s3836_s26 + $0x284] ss:$16 sps:$4 sm:$0xff]   ;;  %v3437_v59 = vld [vmem:[%s3836_s26 + $0x280] ss:$16 sps:$4 sm:$0xff]   ;;  %s3543_s30 = sshll.u32 %s3672_s21, 4  ;;  %s3544_s30 = int_to_ptr.vmem [resolvable:$false] %s3543_s30 }
  0x6e   : > { %326 = vperm.xlu1 %3281, %v3924_v42   ;;  %2130 = vmatpush1.bf16.msra.mxu1 %v3370_v7  ;;  %v3406_v7 = vld [vmem:[%s3836_s26 + $0x1c8] ss:$16 sps:$4 sm:$0xff]   ;;  %s3545_s28 = scalar_lea.vmem %s3544_s30, 16384  ;;  %p3546_p1 = scmp.lt.s32.totalorder %s5817_s15, %s3544_s30 }
  0x6f   : > { %1905 = vmatprep.subr.bf16.mxu0 %v3371_v8  ;;  %2131 = vmatprep.subr.bf16.mxu1 %v3373_v10  ;;  %v3407_v8 = vld [vmem:[%s3836_s26 + $0x1e4] ss:$16 sps:$4 sm:$0xff]   ;;  %v3411_v10 = vld [vmem:[%s3836_s26 + $0x1e0] ss:$16 sps:$4 sm:$0xff]   ;;  %p3547_p5 = scmp.lt.s32.totalorder %s3545_s28, %s3539_s27 }
  0x70   : > { %3294 = vset.pattern.permute.xlu0 %v3668_v1 }
  0x71   : > { %438 = vperm.xlu0 %3294, %v3924_v42   ;;  %1906 = vmatpush1.bf16.msra.mxu0 %v3375_v11  ;;  %v4017_v11 = vadd.s32 %v3157_v6, %v3860_v24  ;;  %v3421_v6 = vld [vmem:[%s3836_s26 + $0x224] ss:$16 sps:$4 sm:$0xff]   ;;  %p3548_p8 = por %p3547_p5, %p3546_p1 }
  0x72   : > { %329 = vperm.xlu1 %3281, %v3878_v46   ;;  %2132 = vmatpush1.bf16.msra.mxu1 %v3376_v16  ;;  %v3418_v16 = vld [vmem:[%s3836_s26 + $0x20c] ss:$16 sps:$4 sm:$0xff]  }
  0x73   : > { %1907 = vmatprep.subr.bf16.mxu0 %v3377_v17  ;;  %2133 = vmatprep.subr.bf16.mxu1 %v3379_v18  ;;  %p3549_p3 = pnand %p3548_p8, %p3542_p0 }
  0x75   : > { %447 = vperm.xlu0 %3294, %v3941_v58   ;;  %1908 = vmatpush1.bf16.msra.mxu0 %v3381_v22  ;;  %v4091_v22 = vadd.s32 384, %v3855_v13 }
  0x76   : > { %3282 = vset.pattern.permute.xlu1 %v3668_v1  ;;  %2134 = vmatpush1.bf16.msra.mxu1 %v3382_v23  ;;  %v4094_v23 = vadd.s32 256, %v3855_v13 }
  0x77   : > { %441 = vperm.xlu1 %3282, %v3878_v46   ;;  %1909 = vmatprep.subr.bf16.mxu0 %v3383_v28 }
  0x78   : > { %2135 = vmatprep.subr.bf16.mxu1 %v3385_v29  ;;  %v5956_v29 = vmov 0 }
  0x79   : > { %456 = vperm.xlu0 %3294, %v3952_v5   ;;  %1910 = vmatpush1.bf16.msra.mxu0 %v3387_v37 }
  0x7a   : > { %2136 = vmatpush1.bf16.msra.mxu1 %v3388_v38  ;;  %1911 = vmatprep.subr.bf16.mxu0 %v3389_v41  ;;  %v5958_v38 = vmov 0  ;;  %v5960_v41 = vmov 0 }
  0x7b   : > { %3283 = vset.pattern.permute.xlu1 %v3667_v0  ;;  %2137 = vmatprep.subr.bf16.mxu1 %v3391_v43 }
  0x7c   : > { %614 = vperm.xlu1 %3283, %v3924_v42  }
  0x7d   : > { %465 = vperm.xlu0 %3294, %v3963_v12   ;;  %1912 = vmatpush1.bf16.msra.mxu0 %v3393_v50  ;;  %v5973_v50 = vmov 0 }
  0x7e   : > { %2138 = vmatpush1.bf16.msra.mxu1 %v3394_v51  ;;  %1913 = vmatprep.subr.bf16.mxu0 %v3395_v53  ;;  %v3442_v51 = vld [vmem:[%s3836_s26 + $0x28c] ss:$16 sps:$4 sm:$0xff]  }
  0x7f   : > { %2139 = vmatprep.subr.bf16.mxu1 %v3397_v54 }
  0x80   : > { %3285 = vset.pattern.permute.xlu1 %v3669_v14 }
  0x81   : > { %3301 = vset.pattern.permute.xlu0 %v3670_v48  ;;  %790 = vperm.xlu1 %3285, %v3924_v42   ;;  %v279_v42 = vmul.f32 99.0, %v263_v39 }
  0x82   : > { %320 = vperm.xlu0 %3301, %v3870_v40   ;;  %v264_v40 = vmin.f32 %v248_v44, 1.0  ;;  %2140 = vmatpush1.bf16.msra.mxu1 %v3400_v61  ;;  %v3440_v61 = vld [vmem:[%s3836_s26 + $0x288] ss:$16 sps:$4 sm:$0xff]  }
  0x83   : > { %v3160_v52 = vcvt.f32.s32 %v279_v42  ;;  %2141 = vmatprep.subr.bf16.mxu1 %v3403_v63  ;;  %v5966_v42 = vmov 0 }
  0x84   : > { %v280_v56 = vmul.f32 99.0, %v264_v40  ;;  %v3431_v40 = vld [vmem:[%s3836_s26 + $0x260] ss:$16 sps:$4 sm:$0xff]  }
  0x85   : > { %793 = vperm.xlu1 %3285, %v3878_v46   ;;  %v3992_v46 = vadd.s32 %v3160_v52, %v3860_v24  ;;  %v5978_v52 = vmov 0 }
  0x86   : > { %323 = vperm.xlu0 %3301, %v3881_v47   ;;  %v3399_v47 = vld [vmem:[%s3836_s26 + $0x1a0] ss:$16 sps:$4 sm:$0xff]   ;;  %v3163_v57 = vcvt.f32.s32 %v280_v56  ;;  %2142 = vmatpush1.bf16.msra.mxu1 %v3406_v7  ;;  %v3424_v7 = vld [vmem:[%s3836_s26 + $0x22c] ss:$16 sps:$4 sm:$0xff]   ;;  %v3458_v56 = vld [vmem:[%s3836_s26 + $0x2e8] ss:$16 sps:$4 sm:$0xff]  }
  0x87   : > { %1914 = vmatpush1.bf16.msra.mxu0 %v3399_v47  ;;  %2143 = vmatprep.subr.bf16.mxu1 %v3409_v9  ;;  %v3419_v9 = vld [vmem:[%s3836_s26 + $0x220] ss:$16 sps:$4 sm:$0xff]  }
  0x88   : > { %v4002_v2 = vadd.s32 %v3163_v57, %v3860_v24  ;;  %1915 = vmatprep.subr.bf16.mxu0 %v3401_v62 }
  0x89   : > { %3286 = vset.pattern.permute.xlu1 %v3670_v48 }
  0x8a   : > { %335 = vperm.xlu1 %3286, %v3941_v58   ;;  %332 = vperm.xlu0 %3301, %v3902_v19  }
  0x8b   : > { %1916 = vmatpush1.bf16.msra.mxu0 %v3405_v3  ;;  %2144 = vmatpush1.bf16.msra.mxu1 %v3412_v15  ;;  %v3413_v3 = vld [vmem:[%s3836_s26 + $0x200] ss:$16 sps:$4 sm:$0xff]   ;;  %v3427_v15 = vld [vmem:[%s3836_s26 + $0x244] ss:$16 sps:$4 sm:$0xff]  }
  0x8c   : > { %1917 = vmatprep.subr.bf16.mxu0 %v3407_v8  ;;  %2226 = vmatprep.subr.bf16.mxu1 %v3418_v16  ;;  %v3425_v16 = vld [vmem:[%s3836_s26 + $0x240] ss:$16 sps:$4 sm:$0xff]   ;;  %v3446_v8 = vld [vmem:[%s3836_s26 + $0x2a8] ss:$16 sps:$4 sm:$0xff]  }
  0x8e   : > { %3287 = vset.pattern.permute.xlu1 %v3668_v1  ;;  %341 = vperm.xlu0 %3301, %v3918_v34  }
  0x8f   : > { %444 = vperm.xlu1 %3287, %v3902_v19   ;;  %1918 = vmatpush1.bf16.msra.mxu0 %v3411_v10 }
  0x92   : > { %350 = vperm.xlu0 %3301, %v4008_v4  }
  0x93   : > { %3288 = vset.pattern.permute.xlu1 %v3667_v0 }
  0x94   : > { %620 = vperm.xlu1 %3288, %v3902_v19  }
  0x96   : > { %359 = vperm.xlu0 %3301, %v4017_v11  }
  0x98   : > { %623 = vperm.xlu1 %3288, %v3941_v58  }
  0x9a   : > { %3305 = vset.pattern.permute.xlu0 %v3667_v0 }
  0x9b   : > { %626 = vperm.xlu0 %3305, %v3907_v26  }
  0x9c   : > { %3289 = vset.pattern.permute.xlu1 %v3669_v14 }
  0x9d   : > { %799 = vperm.xlu1 %3289, %v3941_v58  }
  0x9f   : > { %635 = vperm.xlu0 %3305, %v3911_v30  }
  0xa1   : > { %3290 = vset.pattern.permute.xlu1 %v3670_v48 }
  0xa2   : > { %338 = vperm.xlu1 %3290, %v3907_v26  }
  0xa3   : > { %644 = vperm.xlu0 %3305, %v3934_v55  }
  0xa6   : > { %3291 = vset.pattern.permute.xlu1 %v3668_v1 }
  0xa7   : > { %450 = vperm.xlu1 %3291, %v3907_v26   ;;  %3307 = vset.pattern.permute.xlu0 %v3669_v14 }
  0xa8   : > { %814 = vperm.xlu0 %3307, %v4008_v4  }
  0xab   : > { %453 = vperm.xlu1 %3291, %v3918_v34  }
  0xac   : > { %823 = vperm.xlu0 %3307, %v4017_v11  }
  0xaf   : > { %3292 = vset.pattern.permute.xlu1 %v3667_v0 }
  0xb0   : > { %629 = vperm.xlu1 %3292, %v3918_v34   ;;  %3311 = vset.pattern.permute.xlu0 %v3668_v1 }
  0xb1   : > { %474 = vperm.xlu0 %3311, %v3992_v46  }
  0xb4   : > { %3293 = vset.pattern.permute.xlu1 %v3669_v14 }
  0xb5   : > { %802 = vperm.xlu1 %3293, %v3907_v26   ;;  %3314 = vset.pattern.permute.xlu0 %v3667_v0 }
  0xb6   : > { %653 = vperm.xlu0 %3314, %v4002_v2  }
  0xb9   : > { %3295 = vset.pattern.permute.xlu1 %v3670_v48 }
  0xba   : > { %344 = vperm.xlu1 %3295, %v3952_v5   ;;  %3316 = vset.pattern.permute.xlu0 %v3669_v14 }
  0xbe   : > { %347 = vperm.xlu1 %3295, %v3911_v30  }
  0xc2   : > { %3296 = vset.pattern.permute.xlu1 %v3668_v1 }
  0xc3   : > { %459 = vperm.xlu1 %3296, %v3911_v30  }
  0xc7   : > { %3297 = vset.pattern.permute.xlu1 %v3667_v0 }
  0xc8   : > { %632 = vperm.xlu1 %3297, %v3952_v5  }
  0xcc   : > { %3298 = vset.pattern.permute.xlu1 %v3669_v14 }
  0xcd   : > { %808 = vperm.xlu1 %3298, %v3952_v5   ;;  %v3415_v5 = vld [vmem:[%s3836_s26 + $0x204] ss:$16 sps:$4 sm:$0xff]  }
  0xce   : > { %2000 = vmatprep.subr.bf16.mxu0 %v3415_v5  ;;  %v3430_v5 = vld [vmem:[%s3836_s26 + $0x24c] ss:$16 sps:$4 sm:$0xff]  }
  0xd1   : > { %811 = vperm.xlu1 %3298, %v3911_v30  }
  0xd5   : > { %3299 = vset.pattern.permute.xlu1 %v3670_v48 }
  0xd6   : > { %353 = vperm.xlu1 %3299, %v3963_v12  }
  0xda   : > { %3300 = vset.pattern.permute.xlu1 %v3668_v1  ;;  %v4060_v24 = vpop.permute.xlu1 %432  ;;  %v4062_v19 = vpop.permute.xlu0 %608 }
  0xdb   : > { %462 = vperm.xlu1 %3300, %v4008_v4   ;;  %vm657_vm14 = vcmp.eq.s32.totalorder %v4062_v19, %v4094_v23 }
  0xde   : > { %v4065_v26 = vpop.permute.xlu1 %435  ;;  %v4067_v34 = vpop.permute.xlu0 %617 }
  0xdf   : > { %3302 = vset.pattern.permute.xlu1 %v3667_v0  ;;  %vm670_vm8 = vcmp.eq.s32.totalorder %v4067_v34, %v4091_v22 }
  0xe0   : > { %638 = vperm.xlu1 %3302, %v4008_v4   ;;  %v3416_v4 = vld [vmem:[%s3836_s26 + $0x208] ss:$16 sps:$4 sm:$0xff]  }
  0xe3   : > { %v4071_v30 = vpop.permute.xlu1 %611  ;;  %v4073_v58 = vpop.permute.xlu0 %787 }
  0xe4   : > { %641 = vperm.xlu1 %3302, %v3963_v12  }
  0xe7   : > { %v4078_v17 = vpop.permute.xlu0 %796 }
  0xe8   : > { %3303 = vset.pattern.permute.xlu1 %v3669_v14  ;;  %v4081_v18 = vpop.permute.xlu1 %784 }
  0xe9   : > { %817 = vperm.xlu1 %3303, %v3963_v12  }
  0xeb   : > { %v4084_v20 = vpop.permute.xlu0 %805 }
  0xed   : > { %3304 = vset.pattern.permute.xlu1 %v3670_v48  ;;  %v4087_v21 = vpop.permute.xlu1 %326 }
  0xee   : > { %356 = vperm.xlu1 %3304, %v3934_v55   ;;  %vm378_vm2 = vcmp.eq.s32.totalorder %v4087_v21, %v4091_v22  ;;  %vm377_vm3 = vcmp.eq.s32.totalorder %v4087_v21, %v4094_v23  ;;  %vm376_vm15 = vcmp.eq.s32.totalorder %v4087_v21, %v4134_v36 }
  0xf0   : > { %v4096_v25 = vpop.permute.xlu0 %438 }
  0xf1   : > { %vm490_vm0 = vcmp.eq.s32.totalorder %v4096_v25, %v4091_v22  ;;  %v4100_v12 = vpop.permute.xlu1 %329  ;;  %vm489_vm1 = vcmp.eq.s32.totalorder %v4096_v25, %v4094_v23  ;;  %vm488_vm10 = vcmp.eq.s32.totalorder %v4096_v25, %v4134_v36 }
  0xf2   : > { %3306 = vset.pattern.permute.xlu1 %v3668_v1  ;;  %vm4112_vm4 = vmor %vm378_vm2, %vm490_vm0  ;;  %vm382_vm9 = vcmp.eq.s32.totalorder %v4100_v12, %v4091_v22  ;;  %vm380_vm2 = vcmp.eq.s32.totalorder %v4100_v12, %v4134_v36 }
  0xf3   : > { %468 = vperm.xlu1 %3306, %v3934_v55   ;;  %vm4116_vm5 = vmor %vm377_vm3, %vm489_vm1  ;;  %vm481_vm1 = vcmp.eq.s32.totalorder %v4060_v24, %v4094_v23 }
  0xf4   : > { %v4110_v27 = vpop.permute.xlu0 %447  ;;  %v5957_v29 = vsel %vm4116_vm5, 4294967295, %v5956_v29 }
  0xf6   : > { %v4120_v31 = vpop.permute.xlu1 %441 }
  0xf7   : > { %471 = vperm.xlu1 %3306, %v4017_v11   ;;  %vm494_vm6 = vcmp.eq.s32.totalorder %v4120_v31, %v4091_v22  ;;  %vm492_vm12 = vcmp.eq.s32.totalorder %v4120_v31, %v4134_v36  ;;  %vm5972_vm5 = vcmp.eq.s32.totalorder %v4120_v31, %v3855_v13 }
  0xf8   : > { %v4123_v32 = vpop.permute.xlu0 %456  ;;  %vm558_vm11 = vmor %vm382_vm9, %vm494_vm6 }
  0xf9   : > { %vm4162_vm0 = vmor %vm558_vm11, %vm670_vm8 }
  0xfa   : > { %v5961_v41 = vsel %vm4162_vm0, 4294967295, %v5960_v41  ;;  %vm4185_vm11 = vmor %vm380_vm2, %vm492_vm12  ;;  %vm480_vm12 = vcmp.eq.s32.totalorder %v4060_v24, %v4134_v36  ;;  %vm485_vm2 = vcmp.eq.s32.totalorder %v4065_v26, %v4094_v23 }
  0xfb   : > { %3308 = vset.pattern.permute.xlu1 %v3667_v0  ;;  %v4126_v33 = vpop.permute.xlu1 %614 }
  0xfc   : > { %647 = vperm.xlu1 %3308, %v4017_v11   ;;  %v4131_v35 = vpop.permute.xlu0 %465  ;;  %vm666_vm7 = vcmp.eq.s32.totalorder %v4126_v33, %v4091_v22 }
  0xfd   : > { %vm4151_vm13 = vmor %vm4112_vm4, %vm666_vm7  ;;  %vm664_vm7 = vcmp.eq.s32.totalorder %v4126_v33, %v4134_v36 }
  0xfe   : > { %v5959_v38 = vsel %vm4151_vm13, 4294967295, %v5958_v38  ;;  %vm4172_vm4 = vmor %vm376_vm15, %vm488_vm10  ;;  %vm833_vm10 = vcmp.eq.s32.totalorder %v4081_v18, %v4094_v23 }
  0xff   : > { %vm4230_vm15 = vmor %vm4172_vm4, %vm664_vm7  ;;  %vm5975_vm4 = vcmp.eq.s32.totalorder %v4096_v25, %v3855_v13  ;;  %v3433_v25 = vld [vmem:[%s3836_s26 + $0x264] ss:$16 sps:$4 sm:$0xff]  }
 0x100   : > { %3309 = vset.pattern.permute.xlu1 %v3669_v14  ;;  %v4147_v37 = vpop.permute.xlu1 %790 }
 0x101   : > { %v4159_v39 = vpop.permute.xlu0 %320  ;;  %820 = vperm.xlu1 %3309, %v3934_v55   ;;  %v3436_v55 = vld [vmem:[%s3836_s26 + $0x26c] ss:$16 sps:$4 sm:$0xff]  }
 0x102   : > { %vm369_vm3 = vcmp.eq.s32.totalorder %v4159_v39, %v4094_v23  ;;  %vm368_vm9 = vcmp.eq.s32.totalorder %v4159_v39, %v4134_v36 }
 0x103   : > { %vm545_vm8 = vmor %vm369_vm3, %vm481_vm1  ;;  %vm379_vm3 = vcmp.eq.s32.totalorder %v4100_v12, %v3855_v13 }
 0x104   : > { %vm721_vm1 = vmor %vm545_vm8, %vm657_vm14  ;;  %v4196_v44 = vpop.permute.xlu1 %793  ;;  %vm837_vm14 = vcmp.eq.s32.totalorder %v4073_v58, %v4094_v23  ;;  %vm375_vm8 = vcmp.eq.s32.totalorder %v4087_v21, %v3855_v13  ;;  %v3428_v21 = vld [vmem:[%s3836_s26 + $0x248] ss:$16 sps:$4 sm:$0xff]  }
 0x105   : > { %vm4200_vm6 = vmor %vm721_vm1, %vm833_vm10  ;;  %v4204_v45 = vpop.permute.xlu0 %323  ;;  %3310 = vset.pattern.permute.xlu1 %v3670_v48 }
 0x106   : > { %v5967_v42 = vsel %vm4200_vm6, 4294967295, %v5966_v42  ;;  %vm373_vm10 = vcmp.eq.s32.totalorder %v4204_v45, %v4094_v23  ;;  %362 = vperm.xlu1 %3310, %v3992_v46   ;;  %vm4221_vm1 = vmor %vm368_vm9, %vm480_vm12  ;;  %vm661_vm9 = vcmp.eq.s32.totalorder %v4071_v30, %v4094_v23  ;;  %vm372_vm13 = vcmp.eq.s32.totalorder %v4204_v45, %v4134_v36 }
 0x107   : > { %vm4237_vm0 = vmor %vm379_vm3, %vm5972_vm5  ;;  %vm656_vm5 = vcmp.eq.s32.totalorder %v4062_v19, %v4134_v36 }
 0x108   : > { %v5974_v50 = vsel %vm4237_vm0, 4294967295, %v5973_v50  ;;  %vm549_vm12 = vmor %vm373_vm10, %vm485_vm2  ;;  %vm484_vm2 = vcmp.eq.s32.totalorder %v4065_v26, %v4134_v36 }
 0x109   : > { %vm4248_vm7 = vmor %vm375_vm8, %vm5975_vm4  ;;  %v4258_v53 = vpop.permute.xlu1 %335  ;;  %vm668_vm8 = vcmp.eq.s32.totalorder %v4067_v34, %v4134_v36  ;;  %vm832_vm4 = vcmp.eq.s32.totalorder %v4081_v18, %v4134_v36  ;;  %v4328_v60 = vpop.permute.xlu0 %332 }
 0x10a   : > { %vm725_vm6 = vmor %vm549_vm12, %vm661_vm9  ;;  %365 = vperm.xlu1 %3310, %v4002_v2   ;;  %vm660_vm9 = vcmp.eq.s32.totalorder %v4071_v30, %v4134_v36 }
 0x10b   : > { %vm4254_vm3 = vmor %vm725_vm6, %vm837_vm14  ;;  %vm836_vm14 = vcmp.eq.s32.totalorder %v4073_v58, %v4134_v36 }
 0x10c   : > { %v5979_v52 = vsel %vm4254_vm3, 4294967295, %v5978_v52  ;;  %vm548_vm10 = vmor %vm372_vm13, %vm484_vm2  ;;  %vm840_vm3 = vcmp.eq.s32.totalorder %v4147_v37, %v4134_v36  ;;  %vm663_vm13 = vcmp.eq.s32.totalorder %v4126_v33, %v3855_v13  ;;  %vm367_vm2 = vcmp.eq.s32.totalorder %v4159_v39, %v3855_v13 }
 0x10d   : > { %vm720_vm6 = vmor %vm4221_vm1, %vm656_vm5  ;;  %vm371_vm5 = vcmp.eq.s32.totalorder %v4204_v45, %v3855_v13  ;;  %v4351_v63 = vpop.permute.xlu0 %341 }
 0x10e   : > { %vm724_vm12 = vmor %vm548_vm10, %vm660_vm9  ;;  %3312 = vset.pattern.permute.xlu1 %v3668_v1  ;;  %v4294_v47 = vpop.permute.xlu1 %444  ;;  %v3671_v1 = vmov 1.0|1.0  }
 0x10f   : > { %vm4279_vm0 = vmor %vm720_vm6, %vm832_vm4  ;;  %vm479_vm6 = vcmp.eq.s32.totalorder %v4060_v24, %v3855_v13  ;;  %vm655_vm4 = vcmp.eq.s32.totalorder %v4062_v19, %v3855_v13  ;;  %477 = vperm.xlu1 %3312, %v4002_v2  }
 0x110   : > { %vm900_vm10 = vmor %vm724_vm12, %vm836_vm14  ;;  %vm5989_vm12 = vnez %v5974_v50  ;;  %v3434_v50 = vld [vmem:[%s3836_s26 + $0x268] ss:$16 sps:$4 sm:$0xff]  }
 0x111   : > { %vm4289_vm9 = vmor %vm4185_vm11, %vm668_vm8  ;;  %vm483_vm11 = vcmp.eq.s32.totalorder %v4065_v26, %v3855_v13  ;;  %vm5988_vm8 = vcmp.eq.s32.totalorder %v4067_v34, %v3855_v13  ;;  %v4403_v10 = vpop.permute.xlu0 %350 }
 0x112   : > { %vm2915_vm1 = vmpackc.low %vm900_vm10, %vm4279_vm0  ;;  %vm831_vm10 = vcmp.eq.s32.totalorder %v4081_v18, %v3855_v13 }
 0x113   : > { %vm4304_vm14 = vmor %vm4230_vm15, %vm840_vm3  ;;  %2916 = vmatprep.mubr.msk.bf16.mxu0 %vm2915_vm1, %v3671_v1  ;;  %2980 = vmatprep.mubr.msk.bf16.mxu1 %vm2915_vm1, %v3671_v1  ;;  %vm835_vm1 = vcmp.eq.s32.totalorder %v4073_v58, %v3855_v13  ;;  %v4346_v62 = vpop.permute.xlu1 %620 }
 0x114   : > { %vm543_vm0 = vmor %vm367_vm2, %vm479_vm6  ;;  %3313 = vset.pattern.permute.xlu1 %v3667_v0 }
 0x115   : > { %vm4321_vm15 = vmor %vm4248_vm7, %vm663_vm13  ;;  %vm659_vm7 = vcmp.eq.s32.totalorder %v4071_v30, %v3855_v13  ;;  %650 = vperm.xlu1 %3313, %v3992_v46   ;;  %v4464_v43 = vpop.permute.xlu0 %359 }
 0x116   : > { %vm547_vm3 = vmor %vm371_vm5, %vm483_vm11  ;;  %vm844_vm11 = vcmp.eq.s32.totalorder %v4196_v44, %v4134_v36 }
 0x117   : > { %vm4335_vm2 = vmor %vm5989_vm12, %vm5988_vm8  ;;  %vm843_vm12 = vcmp.eq.s32.totalorder %v4196_v44, %v3855_v13  ;;  %v4362_v0 = vpop.permute.xlu1 %623 }
 0x118   : > { %vm719_vm13 = vmor %vm543_vm0, %vm655_vm4 }
 0x119   : > { %vm723_vm5 = vmor %vm547_vm3, %vm659_vm7  ;;  %vm839_vm3 = vcmp.eq.s32.totalorder %v4147_v37, %v3855_v13  ;;  %3315 = vset.pattern.permute.xlu1 %v3669_v14  ;;  %v3472_v14 = vld [vmem:[%s3836_s26 + $0x32c] ss:$16 sps:$4 sm:$0xff]  }
 0x11a   : > { %vm895_vm6 = vmor %vm719_vm13, %vm831_vm10  ;;  %vm496_vm13 = vcmp.eq.s32.totalorder %v4294_v47, %v4134_v36  ;;  %826 = vperm.xlu1 %3315, %v3992_v46   ;;  %v3422_v46 = vld [vmem:[%s3836_s26 + $0x228] ss:$16 sps:$4 sm:$0xff]   ;;  %v4503_v57 = vpop.permute.xlu0 %626 }
 0x11b   : > { %vm899_vm4 = vmor %vm723_vm5, %vm835_vm1  ;;  %vm500_vm1 = vcmp.eq.s32.totalorder %v4110_v27, %v4134_v36  ;;  %vm388_vm5 = vcmp.eq.s32.totalorder %v4258_v53, %v4134_v36 }
 0x11c   : > { %vm2917_vm0 = vmpackc.low %vm899_vm4, %vm895_vm6  ;;  %v4407_v11 = vpop.permute.xlu1 %799 }
 0x11d   : > { %2918 = vmatmul.mubr.msk.bf16.vlgmr.msra.gmra.mrb[0].mxu0 %vm2917_vm0, %v3671_v1  ;;  %2982 = vmatmul.mubr.msk.bf16.vlgmr.msra.gmra.mrb[0].mxu1 %vm2917_vm0, %v3671_v1  ;;  %vm908_vm8 = vmor %vm4289_vm9, %vm844_vm11  ;;  %vm384_vm9 = vcmp.eq.s32.totalorder %v4328_v60, %v4134_v36  ;;  %vm848_vm0 = vcmp.eq.s32.totalorder %v4078_v17, %v4134_v36 }
 0x11e   : > { %vm2919_vm7 = vmpackc.low %vm908_vm8, %vm4304_vm14  ;;  %2001 = vmatpush1.bf16.msra.mxu0 %v3413_v3  ;;  %2227 = vmatpush1.bf16.msra.mxu1 %v3416_v4  ;;  %vm852_vm8 = vcmp.eq.s32.totalorder %v4407_v11, %v4134_v36  ;;  %v3445_v3 = vld [vmem:[%s3836_s26 + $0x2a4] ss:$16 sps:$4 sm:$0xff]   ;;  %v3448_v4 = vld [vmem:[%s3836_s26 + $0x2ac] ss:$16 sps:$4 sm:$0xff]  }
 0x11f   : > { %2920 = vmatprep.mubr.msk.bf16.mxu0 %vm2919_vm7, %v3671_v1  ;;  %2984 = vmatprep.mubr.msk.bf16.mxu1 %vm2919_vm7, %v3671_v1  ;;  %vm4381_vm14 = vmor %vm4321_vm15, %vm839_vm3  ;;  %vm672_vm15 = vcmp.eq.s32.totalorder %v4346_v62, %v4134_v36  ;;  %vm383_vm7 = vcmp.eq.s32.totalorder %v4328_v60, %v3855_v13 }
 0x120   : > { %vm4391_vm10 = vmor %vm4335_vm2, %vm843_vm12  ;;  %vm676_vm2 = vcmp.eq.s32.totalorder %v4362_v0, %v4134_v36  ;;  %2002 = vmatprep.subr.bf16.mxu0 %v3421_v6  ;;  %2228 = vmatprep.subr.bf16.mxu1 %v3424_v7  ;;  %v3443_v7 = vld [vmem:[%s3836_s26 + $0x2a0] ss:$16 sps:$4 sm:$0xff]  }
 0x121   : > { %vm2921_vm6 = vmpackc.low %vm4391_vm10, %vm4381_vm14  ;;  %829 = vperm.xlu1 %3315, %v4002_v2   ;;  %vm499_vm14 = vcmp.eq.s32.totalorder %v4110_v27, %v3855_v13  ;;  %v4462_v28 = vpop.permute.xlu1 %338  ;;  %vm671_vm10 = vcmp.eq.s32.totalorder %v4346_v62, %v3855_v13  ;;  %v6020_v2 = vmov 0 }
 0x122   : > { %vm560_vm11 = vmor %vm384_vm9, %vm496_vm13  ;;  %2003 = vmatpush1.bf16.msra.mxu0 %v3419_v9  ;;  %vm495_vm9 = vcmp.eq.s32.totalorder %v4294_v47, %v3855_v13  ;;  %2229 = vmatpush1.bf16.msra.mxu1 %v3422_v46  ;;  %v3451_v46 = vld [vmem:[%s3836_s26 + $0x2c4] ss:$16 sps:$4 sm:$0xff]   ;;  %v3467_v9 = vld [vmem:[%s3836_s26 + $0x320] ss:$16 sps:$4 sm:$0xff]  }
 0x123   : > { %vm564_vm4 = vmor %vm388_vm5, %vm500_vm1  ;;  %2004 = vmatprep.subr.bf16.mxu0 %v3427_v15  ;;  %vm387_vm1 = vcmp.eq.s32.totalorder %v4258_v53, %v3855_v13  ;;  %2230 = vmatprep.subr.bf16.mxu1 %v3430_v5  ;;  %v3454_v15 = vld [vmem:[%s3836_s26 + $0x2cc] ss:$16 sps:$4 sm:$0xff]  }
 0x124   : > { %vm736_vm3 = vmor %vm560_vm11, %vm672_vm15  ;;  %v3478_v5 = vld [vmem:[%s3836_s26 + $0x34c] ss:$16 sps:$4 sm:$0xff]  }
 0x125   : > { %2922 = vmatmul.mubr.msk.bf16.gmra.mrb[4].mxu0 %vm2921_vm6, %v3671_v1  ;;  %2986 = vmatmul.mubr.msk.bf16.gmra.mrb[4].mxu1 %vm2921_vm6, %v3671_v1  ;;  %vm740_vm12 = vmor %vm564_vm4, %vm676_vm2  ;;  %vm675_vm6 = vcmp.eq.s32.totalorder %v4362_v0, %v3855_v13  ;;  %vm847_vm4 = vcmp.eq.s32.totalorder %v4078_v17, %v3855_v13 }
 0x126   : > { %vm4449_vm13 = vmor %vm736_vm3, %vm848_vm0  ;;  %2005 = vmatpush1.bf16.msra.mxu0 %v3425_v16  ;;  %2231 = vmatpush1.bf16.msra.mxu1 %v3428_v21  ;;  %vm851_vm3 = vcmp.eq.s32.totalorder %v4407_v11, %v3855_v13  ;;  %v4495_v54 = vpop.permute.xlu1 %450  ;;  %v3449_v21 = vld [vmem:[%s3836_s26 + $0x2c0] ss:$16 sps:$4 sm:$0xff]  }
 0x127   : > { %vm916_vm5 = vmor %vm740_vm12, %vm852_vm8  ;;  %2006 = vmatprep.subr.bf16.mxu0 %v3433_v25  ;;  %2232 = vmatprep.subr.bf16.mxu1 %v3436_v55  ;;  %v3457_v25 = vld [vmem:[%s3836_s26 + $0x2e4] ss:$16 sps:$4 sm:$0xff]   ;;  %v6025_v55 = vmov 0 }
 0x128   : > { %vm2923_vm15 = vmpackc.low %vm916_vm5, %vm4449_vm13  ;;  %vm396_vm13 = vcmp.eq.s32.totalorder %v4351_v63, %v4134_v36  ;;  %vm503_vm5 = vcmp.eq.s32.totalorder %v4495_v54, %v3855_v13 }
 0x129   : > { %2924 = vmatprep.mubr.msk.bf16.mxu0 %vm2923_vm15, %v3671_v1  ;;  %2988 = vmatprep.mubr.msk.bf16.mxu1 %vm2923_vm15, %v3671_v1  ;;  %vm559_vm2 = vmor %vm383_vm7, %vm495_vm9  ;;  %vm504_vm7 = vcmp.eq.s32.totalorder %v4495_v54, %v4134_v36 }
 0x12a   : > { %vm563_vm11 = vmor %vm387_vm1, %vm499_vm14  ;;  %2007 = vmatpush1.bf16.msra.mxu0 %v3431_v40  ;;  %2233 = vmatpush1.bf16.msra.mxu1 %v3434_v50  ;;  %vm392_vm1 = vcmp.eq.s32.totalorder %v4462_v28, %v4134_v36  ;;  %v4521_v6 = vpop.permute.xlu1 %453  ;;  %v3460_v40 = vld [vmem:[%s3836_s26 + $0x2ec] ss:$16 sps:$4 sm:$0xff]  }
 0x12b   : > { %vm735_vm0 = vmor %vm559_vm2, %vm671_vm10  ;;  %2008 = vmatprep.subr.bf16.mxu0 %v3439_v49  ;;  %2234 = vmatprep.subr.bf16.mxu1 %v3442_v51  ;;  %vm680_vm10 = vcmp.eq.s32.totalorder %v4503_v57, %v4134_v36  ;;  %vm507_vm2 = vcmp.eq.s32.totalorder %v4521_v6, %v3855_v13  ;;  %v3455_v49 = vld [vmem:[%s3836_s26 + $0x2e0] ss:$16 sps:$4 sm:$0xff]   ;;  %v6061_v51 = vmov 0 }
 0x12c   : > { %vm739_vm8 = vmor %vm563_vm11, %vm675_vm6  ;;  %vm395_vm6 = vcmp.eq.s32.totalorder %v4351_v63, %v3855_v13  ;;  %vm508_vm11 = vcmp.eq.s32.totalorder %v4521_v6, %v4134_v36 }
 0x12d   : > { %vm4497_vm12 = vmor %vm735_vm0, %vm847_vm4  ;;  %vm391_vm4 = vcmp.eq.s32.totalorder %v4462_v28, %v3855_v13  ;;  %vm679_vm0 = vcmp.eq.s32.totalorder %v4503_v57, %v3855_v13 }
 0x12e   : > { %vm915_vm9 = vmor %vm739_vm8, %vm851_vm3  ;;  %2009 = vmatpush1.bf16.msra.mxu0 %v3437_v59  ;;  %2235 = vmatpush1.bf16.msra.mxu1 %v3440_v61  ;;  %vm370_vm8 = vcmp.eq.s32.totalorder %v4159_v39, %v4091_v22  ;;  %v3463_v59 = vld [vmem:[%s3836_s26 + $0x304] ss:$16 sps:$4 sm:$0xff]   ;;  %v3461_v61 = vld [vmem:[%s3836_s26 + $0x300] ss:$16 sps:$4 sm:$0xff]  }
 0x12f   : > { %vm2925_vm14 = vmpackc.low %vm915_vm9, %vm4497_vm12  ;;  %2010 = vmatprep.subr.bf16.mxu0 %v3445_v3  ;;  %2236 = vmatprep.subr.bf16.mxu1 %v3448_v4  ;;  %v4571_v16 = vpop.permute.xlu1 %629  ;;  %v3466_v3 = vld [vmem:[%s3836_s26 + $0x30c] ss:$16 sps:$4 sm:$0xff]   ;;  %v3479_v39 = vld [vmem:[%s3836_s26 + $0x360] ss:$16 sps:$4 sm:$0xff]  }
 0x130   : > { %2926 = vmatmul.mubr.msk.bf16.gmra.mrb[8].mxu0 %vm2925_vm14, %v3671_v1  ;;  %2990 = vmatmul.mubr.msk.bf16.gmra.mrb[8].mxu1 %vm2925_vm14, %v3671_v1  ;;  %vm568_vm15 = vmor %vm392_vm1, %vm504_vm7  ;;  %vm860_vm14 = vcmp.eq.s32.totalorder %v4084_v20, %v4134_v36 }
 0x131   : > { %vm4540_vm3 = vmor %vm396_vm13, %vm508_vm11  ;;  %vm482_vm13 = vcmp.eq.s32.totalorder %v4060_v24, %v4091_v22  ;;  %v3452_v24 = vld [vmem:[%s3836_s26 + $0x2c8] ss:$16 sps:$4 sm:$0xff]   ;;  %vm374_vm11 = vcmp.eq.s32.totalorder %v4204_v45, %v4091_v22  ;;  %v3469_v45 = vld [vmem:[%s3836_s26 + $0x324] ss:$16 sps:$4 sm:$0xff]  }
 0x132   : > { %vm4550_vm12 = vmor %vm568_vm15, %vm680_vm10  ;;  %2011 = vmatpush1.bf16.msra.mxu0 %v3443_v7  ;;  %vm684_vm10 = vcmp.eq.s32.totalorder %v4571_v16, %v4134_v36  ;;  %2237 = vmatpush1.bf16.msra.mxu1 %v3446_v8  ;;  %v3464_v7 = vld [vmem:[%s3836_s26 + $0x308] ss:$16 sps:$4 sm:$0xff]  }
 0x133   : > { %vm567_vm7 = vmor %vm391_vm4, %vm503_vm5  ;;  %vm683_vm5 = vcmp.eq.s32.totalorder %v4571_v16, %v3855_v13  ;;  %2012 = vmatprep.subr.bf16.mxu0 %v3451_v46  ;;  %2238 = vmatprep.subr.bf16.mxu1 %v3454_v15  ;;  %v3475_v46 = vld [vmem:[%s3836_s26 + $0x344] ss:$16 sps:$4 sm:$0xff]   ;;  %v3470_v15 = vld [vmem:[%s3836_s26 + $0x328] ss:$16 sps:$4 sm:$0xff]  }
 0x134   : > { %vm4565_vm9 = vmor %vm395_vm6, %vm507_vm2  ;;  %vm859_vm2 = vcmp.eq.s32.totalorder %v4084_v20, %v3855_v13  ;;  %v4615_v50 = vpop.permute.xlu1 %802 }
 0x135   : > { %vm4578_vm1 = vmor %vm567_vm7, %vm679_vm0  ;;  %vm856_vm7 = vcmp.eq.s32.totalorder %v4615_v50, %v4134_v36 }
 0x136   : > { %vm4592_vm15 = vmor %vm370_vm8, %vm482_vm13  ;;  %2013 = vmatpush1.bf16.msra.mxu0 %v3449_v21  ;;  %2239 = vmatpush1.bf16.msra.mxu1 %v3452_v24  ;;  %v3476_v21 = vld [vmem:[%s3836_s26 + $0x348] ss:$16 sps:$4 sm:$0xff]  }
 0x137   : > { %vm748_vm6 = vmor %vm4540_vm3, %vm684_vm10  ;;  %vm486_vm3 = vcmp.eq.s32.totalorder %v4065_v26, %v4091_v22  ;;  %2014 = vmatprep.subr.bf16.mxu0 %v3457_v25  ;;  %2240 = vmatprep.subr.bf16.mxu1 %v3460_v40  ;;  %v3484_v25 = vld [vmem:[%s3836_s26 + $0x36c] ss:$16 sps:$4 sm:$0xff]   ;;  %v4725_v40 = vpop.permute.xlu0 %635 }
 0x138   : > { %vm4606_vm4 = vmor %vm748_vm6, %vm860_vm14  ;;  %v3490_v26 = vld [vmem:[%s3836_s26 + $0x38c] ss:$16 sps:$4 sm:$0xff]  }
 0x139   : > { %vm747_vm0 = vmor %vm4565_vm9, %vm683_vm5  ;;  %vm855_vm9 = vcmp.eq.s32.totalorder %v4615_v50, %v3855_v13  ;;  %vm658_vm5 = vcmp.eq.s32.totalorder %v4062_v19, %v4091_v22  ;;  %v4649_v4 = vpop.permute.xlu1 %344 }
 0x13a   : > { %vm4617_vm8 = vmor %vm747_vm0, %vm859_vm2  ;;  %2015 = vmatpush1.bf16.msra.mxu0 %v3455_v49  ;;  %2241 = vmatpush1.bf16.msra.mxu1 %v3458_v56  ;;  %vm662_vm2 = vcmp.eq.s32.totalorder %v4071_v30, %v4091_v22  ;;  %v6018_v30 = vmov 0  ;;  %v6028_v49 = vmov 0  ;;  %v3482_v56 = vld [vmem:[%s3836_s26 + $0x368] ss:$16 sps:$4 sm:$0xff]  }
 0x13b   : > { %vm4630_vm13 = vmor %vm374_vm11, %vm486_vm3  ;;  %2016 = vmatprep.subr.bf16.mxu0 %v3463_v59  ;;  %2242 = vmatprep.subr.bf16.mxu1 %v3466_v3  ;;  %vm838_vm11 = vcmp.eq.s32.totalorder %v4073_v58, %v4091_v22  ;;  %v3473_v58 = vld [vmem:[%s3836_s26 + $0x340] ss:$16 sps:$4 sm:$0xff]   ;;  %v3508_v59 = vld [vmem:[%s3836_s26 + $0x3ec] ss:$16 sps:$4 sm:$0xff]  }
 0x13c   : > { %vm920_vm14 = vmor %vm4550_vm12, %vm856_vm7  ;;  %v3506_v3 = vld [vmem:[%s3836_s26 + $0x3e8] ss:$16 sps:$4 sm:$0xff]  }
 0x13d   : > { %vm2927_vm10 = vmpackc.low %vm4606_vm4, %vm920_vm14  ;;  %v4670_v19 = vpop.permute.xlu1 %347  ;;  %vm834_vm4 = vcmp.eq.s32.totalorder %v4081_v18, %v4091_v22  ;;  %v3481_v18 = vld [vmem:[%s3836_s26 + $0x364] ss:$16 sps:$4 sm:$0xff]   ;;  %vm400_vm14 = vcmp.eq.s32.totalorder %v4649_v4, %v4134_v36 }
 0x13e   : > { %2928 = vmatprep.mubr.msk.bf16.mxu0 %vm2927_vm10, %v3671_v1  ;;  %2992 = vmatprep.mubr.msk.bf16.mxu1 %vm2927_vm10, %v3671_v1  ;;  %vm919_vm6 = vmor %vm4578_vm1, %vm855_vm9  ;;  %vm846_vm9 = vcmp.eq.s32.totalorder %v4196_v44, %v4091_v22 }
 0x13f   : > { %vm2929_vm12 = vmpackc.low %vm4617_vm8, %vm919_vm6  ;;  %2017 = vmatpush1.bf16.msra.mxu0 %v3461_v61  ;;  %2243 = vmatpush1.bf16.msra.mxu1 %v3464_v7  ;;  %vm842_vm8 = vcmp.eq.s32.totalorder %v4147_v37, %v4091_v22  ;;  %v3493_v7 = vld [vmem:[%s3836_s26 + $0x3a4] ss:$16 sps:$4 sm:$0xff]  }
 0x140   : > { %2930 = vmatmul.mubr.msk.bf16.gmra.mrb[12].mxu0 %vm2929_vm12, %v3671_v1  ;;  %2994 = vmatmul.mubr.msk.bf16.gmra.mrb[12].mxu1 %vm2929_vm12, %v3671_v1  ;;  %vm4660_vm1 = vmor %vm4592_vm15, %vm658_vm5  ;;  %vm511_vm12 = vcmp.eq.s32.totalorder %v4123_v32, %v3855_v13 }
 0x141   : > { %2018 = vmatprep.subr.bf16.mxu0 %v3469_v45  ;;  %vm726_vm15 = vmor %vm4630_vm13, %vm662_vm2  ;;  %2244 = vmatprep.subr.bf16.mxu1 %v3472_v14  ;;  %vm512_vm13 = vcmp.eq.s32.totalorder %v4123_v32, %v4134_v36  ;;  %vm6024_vm2 = vnez %v5959_v38  ;;  %v3485_v45 = vld [vmem:[%s3836_s26 + $0x380] ss:$16 sps:$4 sm:$0xff]   ;;  %v6059_v38 = vmov 0 }
 0x142   : > { %vm4680_vm0 = vmor %vm4660_vm1, %vm834_vm4  ;;  %vm399_vm1 = vcmp.eq.s32.totalorder %v4649_v4, %v3855_v13  ;;  %v4711_v24 = vpop.permute.xlu1 %459  ;;  %vm6027_vm4 = vnez %v5961_v41  ;;  %v3487_v41 = vld [vmem:[%s3836_s26 + $0x384] ss:$16 sps:$4 sm:$0xff]  }
 0x143   : > { %v6019_v30 = vsel %vm4680_vm0, 4294967295, %v6018_v30  ;;  %2019 = vmatpush1.bf16.msra.mxu0 %v3467_v9  ;;  %vm4685_vm3 = vmor %vm726_vm15, %vm838_vm11  ;;  %2245 = vmatpush1.bf16.msra.mxu1 %v3470_v15  ;;  %vm516_vm15 = vcmp.eq.s32.totalorder %v4711_v24, %v4134_v36  ;;  %v3488_v9 = vld [vmem:[%s3836_s26 + $0x388] ss:$16 sps:$4 sm:$0xff]   ;;  %v3496_v15 = vld [vmem:[%s3836_s26 + $0x3ac] ss:$16 sps:$4 sm:$0xff]  }
 0x144   : > { %v6021_v2 = vsel %vm4685_vm3, 4294967295, %v6020_v2  ;;  %2020 = vmatprep.subr.bf16.mxu0 %v3475_v46  ;;  %2246 = vmatprep.subr.bf16.mxu1 %v3478_v5  ;;  %vm4719_vm11 = vmor %vm6024_vm2, %vm842_vm8  ;;  %vm515_vm8 = vcmp.eq.s32.totalorder %v4711_v24, %v3855_v13  ;;  %vm850_vm3 = vcmp.eq.s32.totalorder %v4078_v17, %v4091_v22  ;;  %v6071_v5 = vmov 0 }
 0x145   : > { %v6026_v55 = vsel %vm4719_vm11, 4294967295, %v6025_v55  ;;  %vm4733_vm6 = vmor %vm6027_vm4, %vm846_vm9  ;;  %vm404_vm9 = vcmp.eq.s32.totalorder %v4670_v19, %v4134_v36 }
 0x146   : > { %v6029_v49 = vsel %vm4733_vm6, 4294967295, %v6028_v49  ;;  %vm4745_vm2 = vmor %vm400_vm14, %vm512_vm13  ;;  %vm403_vm13 = vcmp.eq.s32.totalorder %v4670_v19, %v3855_v13  ;;  %vm845_vm6 = vcmp.eq.s32.totalorder %v4196_v44, %v4094_v23  ;;  %v3500_v44 = vld [vmem:[%s3836_s26 + $0x3c8] ss:$16 sps:$4 sm:$0xff]  }
 0x147   : > { %2021 = vmatpush1.bf16.msra.mxu0 %v3473_v58  ;;  %vm4758_vm4 = vmor %vm399_vm1, %vm511_vm12  ;;  %2247 = vmatpush1.bf16.msra.mxu1 %v3476_v21  ;;  %v4775_v61 = vpop.permute.xlu1 %632  ;;  %v6075_v21 = vmov 0 }
 0x148   : > { %2022 = vmatprep.subr.bf16.mxu0 %v3481_v18  ;;  %vm4770_vm7 = vmor %vm404_vm9, %vm516_vm15  ;;  %2248 = vmatprep.subr.bf16.mxu1 %v3484_v25  ;;  %vm687_vm9 = vcmp.eq.s32.totalorder %v4775_v61, %v3855_v13  ;;  %vm688_vm14 = vcmp.eq.s32.totalorder %v4775_v61, %v4134_v36  ;;  %vm6040_vm15 = vcmp.eq.s32.totalorder %v4725_v40, %v4134_v36  ;;  %v3499_v18 = vld [vmem:[%s3836_s26 + $0x3c4] ss:$16 sps:$4 sm:$0xff]   ;;  %v3502_v25 = vld [vmem:[%s3836_s26 + $0x3cc] ss:$16 sps:$4 sm:$0xff]  }
 0x149   : > { %vm4777_vm12 = vmor %vm403_vm13, %vm515_vm8  ;;  %vm665_vm13 = vcmp.eq.s32.totalorder %v4126_v33, %v4094_v23 }
 0x14a   : > { %vm4799_vm1 = vmor %vm4745_vm2, %vm688_vm14  ;;  %vm381_vm2 = vcmp.eq.s32.totalorder %v4100_v12, %v4094_v23  ;;  %v3491_v12 = vld [vmem:[%s3836_s26 + $0x3a0] ss:$16 sps:$4 sm:$0xff]  }
 0x14b   : > { %2023 = vmatpush1.bf16.msra.mxu0 %v3479_v39  ;;  %vm4808_vm5 = vmor %vm4770_vm7, %vm6040_vm15  ;;  %2249 = vmatpush1.bf16.msra.mxu1 %v3482_v56  ;;  %vm6045_vm7 = vcmp.eq.s32.totalorder %v4725_v40, %v3855_v13  ;;  %v3503_v56 = vld [vmem:[%s3836_s26 + $0x3e0] ss:$16 sps:$4 sm:$0xff]  }
 0x14c   : > { %2024 = vmatprep.subr.bf16.mxu0 %v3487_v41  ;;  %vm4819_vm14 = vmor %vm4758_vm4, %vm687_vm9  ;;  %2250 = vmatprep.subr.bf16.mxu1 %v3490_v26  ;;  %vm6048_vm4 = vcmp.eq.s32.totalorder %v4120_v31, %v4094_v23  ;;  %v4837_v58 = vpop.permute.xlu1 %808  ;;  %v3494_v31 = vld [vmem:[%s3836_s26 + $0x3a8] ss:$16 sps:$4 sm:$0xff]   ;;  %v3505_v41 = vld [vmem:[%s3836_s26 + $0x3e4] ss:$16 sps:$4 sm:$0xff]  }
 0x14d   : > { %vm4829_vm15 = vmor %vm4777_vm12, %vm6045_vm7  ;;  %vm6049_vm12 = vnez %v5957_v29  ;;  %vm864_vm8 = vcmp.eq.s32.totalorder %v4837_v58, %v4134_v36  ;;  %v6089_v29 = vmov 0 }
 0x14e   : > { %vm557_vm9 = vmor %vm381_vm2, %vm6048_vm4  ;;  %vm863_vm2 = vcmp.eq.s32.totalorder %v4837_v58, %v3855_v13  ;;  %vm6052_vm4 = vcmp.eq.s32.totalorder %v4067_v34, %v4094_v23  ;;  %v6092_v34 = vmov 0 }
 0x14f   : > { %2025 = vmatpush1.bf16.msra.mxu0 %v3485_v45  ;;  %vm4845_vm7 = vmor %vm6049_vm12, %vm665_vm13  ;;  %2251 = vmatpush1.bf16.msra.mxu1 %v3488_v9  ;;  %vm841_vm13 = vcmp.eq.s32.totalorder %v4147_v37, %v4094_v23  ;;  %v3497_v37 = vld [vmem:[%s3836_s26 + $0x3c0] ss:$16 sps:$4 sm:$0xff]   ;;  %v4920_v45 = vpop.permute.xlu0 %644  ;;  %v6113_v9 = vmov 0  ;;  %s5824_s26 = scalar_lea.hbm %s5895_s2, %s3047_s16 }
 0x150   : > { %2026 = vmatprep.subr.bf16.mxu0 %v3493_v7  ;;  %vm4857_vm11 = vmor %vm557_vm9, %vm6052_vm4  ;;  %2252 = vmatprep.subr.bf16.mxu1 %v3496_v15  ;;  %v4879_v39 = vpop.permute.xlu1 %811  ;;  %v6069_v15 = vmov 0 }
 0x151   : > { %vm4865_vm12 = vmor %vm4799_vm1, %vm864_vm8  ;;  %vm868_vm8 = vcmp.eq.s32.totalorder %v4879_v39, %v4134_v36 }
 0x152   : > { %vm4874_vm9 = vmor %vm4819_vm14, %vm863_vm2  ;;  %vm867_vm14 = vcmp.eq.s32.totalorder %v4879_v39, %v3855_v13 }
 0x153   : > { %2027 = vmatpush1.bf16.msra.mxu0 %v3491_v12  ;;  %vm4883_vm1 = vmor %vm4845_vm7, %vm841_vm13  ;;  %2253 = vmatpush1.bf16.msra.mxu1 %v3494_v31  ;;  %vm498_vm13 = vcmp.eq.s32.totalorder %v4294_v47, %v4091_v22  ;;  %v4952_v14 = vpop.permute.xlu0 %814 }
 0x154   : > { %2028 = vmatprep.subr.bf16.mxu0 %v3499_v18  ;;  %v6060_v38 = vsel %vm4883_vm1, 4294967295, %v6059_v38  ;;  %vm4895_vm2 = vmor %vm4857_vm11, %vm845_vm6  ;;  %2254 = vmatprep.subr.bf16.mxu1 %v3502_v25  ;;  %vm524_vm1 = vcmp.eq.s32.totalorder %v4131_v35, %v4134_v36 }
 0x155   : > { %v6062_v51 = vsel %vm4895_vm2, 4294967295, %v6061_v51  ;;  %vm932_vm7 = vmor %vm4808_vm5, %vm868_vm8  ;;  %v4911_v26 = vpop.permute.xlu1 %353  ;;  %vm386_vm5 = vcmp.eq.s32.totalorder %v4328_v60, %v4091_v22  ;;  %vm674_vm8 = vcmp.eq.s32.totalorder %v4346_v62, %v4091_v22  ;;  %vm523_vm2 = vcmp.eq.s32.totalorder %v4131_v35, %v3855_v13 }
 0x156   : > { %vm2931_vm4 = vmpackc.low %vm932_vm7, %vm4865_vm12  ;;  %vm502_vm12 = vcmp.eq.s32.totalorder %v4110_v27, %v4091_v22  ;;  %vm6064_vm10 = vcmp.eq.s32.totalorder %v4911_v26, %v4134_v36 }
 0x157   : > { %2029 = vmatpush1.bf16.msra.mxu0 %v3497_v37  ;;  %2932 = vmatprep.mubr.msk.bf16.mxu0 %vm2931_vm4, %v3671_v1  ;;  %vm931_vm6 = vmor %vm4829_vm15, %vm867_vm14  ;;  %vm678_vm14 = vcmp.eq.s32.totalorder %v4362_v0, %v4091_v22  ;;  %v5106_v33 = vpop.permute.xlu0 %823 }
 0x158   : > { %2996 = vmatprep.mubr.msk.bf16.mxu1 %vm2931_vm4, %v3671_v1  ;;  %vm2933_vm11 = vmpackc.low %vm931_vm6, %vm4874_vm9  ;;  %2255 = vmatpush1.bf16.msra.mxu1 %v3500_v44  ;;  %vm390_vm9 = vcmp.eq.s32.totalorder %v4258_v53, %v4091_v22  ;;  %vm407_vm6 = vcmp.eq.s32.totalorder %v4403_v10, %v3855_v13 }
 0x159   : > { %2030 = vmatprep.subr.bf16.mxu0 %v3505_v41  ;;  %2934 = vmatmul.mubr.msk.bf16.gmra.mrb[16].mxu0 %vm2933_vm11, %v3671_v1  ;;  %vm562_vm4 = vmor %vm386_vm5, %vm498_vm13  ;;  %v6097_v41 = vmov 0 }
 0x15a   : > { %2998 = vmatmul.mubr.msk.bf16.gmra.mrb[16].mxu1 %vm2933_vm11, %v3671_v1  ;;  %2256 = vmatprep.subr.bf16.mxu1 %v3508_v59  ;;  %vm411_vm11 = vcmp.eq.s32.totalorder %v4911_v26, %v3855_v13  ;;  %v4940_v7 = vpop.permute.xlu1 %462  ;;  %vm566_vm15 = vmor %vm390_vm9, %vm502_vm12  ;;  %vm6063_vm12 = vcmp.eq.s32.totalorder %v4403_v10, %v4134_v36  ;;  %v6101_v59 = vmov 0 }
 0x15b   : > { %2031 = vmatpush1.bf16.msra.mxu0 %v3503_v56  ;;  %vm519_vm7 = vcmp.eq.s32.totalorder %v4940_v7, %v3855_v13  ;;  %vm520_vm5 = vcmp.eq.s32.totalorder %v4940_v7, %v4134_v36  ;;  %vm738_vm13 = vmor %vm562_vm4, %vm674_vm8 }
 0x15c   : > { %2257 = vmatpush1.bf16.msra.mxu1 %v3506_v3  ;;  %vm584_vm9 = vmor %vm6063_vm12, %vm520_vm5  ;;  %vm854_vm5 = vcmp.eq.s32.totalorder %v4407_v11, %v4091_v22 }
 0x15d   : > { %vm4960_vm0 = vmor %vm6064_vm10, %vm524_vm1  ;;  %vm872_vm10 = vcmp.eq.s32.totalorder %v4952_v14, %v4134_v36 }
 0x15e   : > { %vm583_vm8 = vmor %vm407_vm6, %vm519_vm7 }
 0x15f   : > { %vm4966_vm4 = vmor %vm411_vm11, %vm523_vm2  ;;  %v4972_v46 = vpop.permute.xlu1 %638 }
 0x160   : > { %vm742_vm12 = vmor %vm566_vm15, %vm678_vm14  ;;  %vm695_vm7 = vcmp.eq.s32.totalorder %v4972_v46, %v3855_v13  ;;  %vm696_vm2 = vcmp.eq.s32.totalorder %v4972_v46, %v4134_v36  ;;  %vm871_vm14 = vcmp.eq.s32.totalorder %v4952_v14, %v3855_v13 }
 0x161   : > { %vm4976_vm1 = vmor %vm738_vm13, %vm850_vm3 }
 0x162   : > { %v6070_v15 = vsel %vm4976_vm1, 4294967295, %v6069_v15  ;;  %vm4984_vm6 = vmor %vm742_vm12, %vm854_vm5  ;;  %vm6088_vm1 = vcmp.eq.s32.totalorder %v4920_v45, %v4134_v36 }
 0x163   : > { %v6072_v5 = vsel %vm4984_vm6, 4294967295, %v6071_v5  ;;  %vm760_vm15 = vmor %vm584_vm9, %vm696_vm2  ;;  %v4994_v18 = vpop.permute.xlu1 %641  ;;  %vm385_vm9 = vcmp.eq.s32.totalorder %v4328_v60, %v4094_v23 }
 0x164   : > { %vm4990_vm11 = vmor %vm760_vm15, %vm872_vm10  ;;  %vm699_vm13 = vcmp.eq.s32.totalorder %v4994_v18, %v3855_v13  ;;  %vm700_vm5 = vcmp.eq.s32.totalorder %v4994_v18, %v4134_v36  ;;  %vm497_vm10 = vcmp.eq.s32.totalorder %v4294_v47, %v4094_v23 }
 0x165   : > { %vm759_vm3 = vmor %vm583_vm8, %vm695_vm7  ;;  %vm501_vm8 = vcmp.eq.s32.totalorder %v4110_v27, %v4094_v23  ;;  %vm389_vm7 = vcmp.eq.s32.totalorder %v4258_v53, %v4094_v23 }
 0x166   : > { %vm5000_vm12 = vmor %vm759_vm3, %vm871_vm14 }
 0x167   : > { %v6076_v21 = vsel %vm5000_vm12, 4294967295, %v6075_v21  ;;  %vm764_vm2 = vmor %vm4960_vm0, %vm700_vm5 }
 0x168   : > { %vm763_vm15 = vmor %vm4966_vm4, %vm699_vm13  ;;  %v5020_v60 = vpop.permute.xlu1 %817  ;;  %vm673_vm13 = vcmp.eq.s32.totalorder %v4346_v62, %v4094_v23  ;;  %v6082_v62 = vmov 0 }
 0x169   : > { %vm5022_vm3 = vmor %vm385_vm9, %vm497_vm10  ;;  %vm876_vm0 = vcmp.eq.s32.totalorder %v5020_v60, %v4134_v36  ;;  %vm875_vm5 = vcmp.eq.s32.totalorder %v5020_v60, %v3855_v13  ;;  %vm677_vm10 = vcmp.eq.s32.totalorder %v4362_v0, %v4094_v23 }
 0x16a   : > { %vm5030_vm12 = vmor %vm389_vm7, %vm501_vm8  ;;  %vm6081_vm8 = vnez %v6076_v21 }
 0x16b   : > { %vm940_vm4 = vmor %vm764_vm2, %vm876_vm0  ;;  %vm849_vm2 = vcmp.eq.s32.totalorder %v4078_v17, %v4094_v23  ;;  %vm853_vm0 = vcmp.eq.s32.totalorder %v4407_v11, %v4094_v23  ;;  %v6084_v17 = vmov 0  ;;  %v6086_v11 = vmov 0 }
 0x16c   : > { %vm2935_vm9 = vmpackc.low %vm940_vm4, %vm4990_vm11 }
 0x16d   : > { %2936 = vmatprep.mubr.msk.bf16.mxu0 %vm2935_vm9, %v3671_v1  ;;  %3000 = vmatprep.mubr.msk.bf16.mxu1 %vm2935_vm9, %v3671_v1  ;;  %vm939_vm14 = vmor %vm763_vm15, %vm875_vm5  ;;  %v5044_v53 = vpop.permute.xlu1 %356 }
 0x16e   : > { %vm2937_vm7 = vmpackc.low %vm939_vm14, %vm6081_vm8  ;;  %vm506_vm14 = vcmp.eq.s32.totalorder %v4495_v54, %v4091_v22  ;;  %vm416_vm8 = vcmp.eq.s32.totalorder %v5044_v53, %v4134_v36 }
 0x16f   : > { %2938 = vmatmul.mubr.msk.bf16.gmra.mrb[20].mxu0 %vm2937_vm7, %v3671_v1  ;;  %3002 = vmatmul.mubr.msk.bf16.gmra.mrb[20].mxu1 %vm2937_vm7, %v3671_v1  ;;  %vm737_vm11 = vmor %vm5022_vm3, %vm673_vm13  ;;  %vm394_vm3 = vcmp.eq.s32.totalorder %v4462_v28, %v4091_v22 }
 0x170   : > { %vm741_vm15 = vmor %vm5030_vm12, %vm677_vm10 }
 0x171   : > { %vm5058_vm5 = vmor %vm737_vm11, %vm849_vm2  ;;  %vm415_vm11 = vcmp.eq.s32.totalorder %v5044_v53, %v3855_v13  ;;  %vm419_vm2 = vcmp.eq.s32.totalorder %v4464_v43, %v3855_v13 }
 0x172   : > { %v6083_v62 = vsel %vm5058_vm5, 4294967295, %v6082_v62  ;;  %vm5062_vm4 = vmor %vm741_vm15, %vm853_vm0  ;;  %v5068_v0 = vpop.permute.xlu1 %468  ;;  %vm420_vm15 = vcmp.eq.s32.totalorder %v4464_v43, %v4134_v36  ;;  %vm682_vm5 = vcmp.eq.s32.totalorder %v4503_v57, %v4091_v22 }
 0x173   : > { %v6085_v17 = vsel %vm5062_vm4, 4294967295, %v6084_v17  ;;  %vm528_vm13 = vcmp.eq.s32.totalorder %v5068_v0, %v4134_v36  ;;  %vm5076_vm9 = vmor %vm394_vm3, %vm506_vm14  ;;  %vm527_vm10 = vcmp.eq.s32.totalorder %v5068_v0, %v3855_v13  ;;  %vm510_vm14 = vcmp.eq.s32.totalorder %v4521_v6, %v4091_v22 }
 0x174   : > { %v6087_v11 = vsel %vm5076_vm9, 4294967295, %v6086_v11  ;;  %vm592_vm0 = vmor %vm416_vm8, %vm528_vm13  ;;  %vm703_vm13 = vcmp.eq.s32.totalorder %v4920_v45, %v3855_v13  ;;  %vm686_vm4 = vcmp.eq.s32.totalorder %v4571_v16, %v4091_v22 }
 0x175   : > { %vm591_vm7 = vmor %vm415_vm11, %vm527_vm10  ;;  %vm6091_vm11 = vcmp.eq.s32.totalorder %v4351_v63, %v4091_v22 }
 0x176   : > { %v5090_v31 = vpop.permute.xlu1 %471  ;;  %vm5113_vm6 = vmor %vm592_vm0, %vm6088_vm1  ;;  %vm6094_vm0 = vnez %v6087_v11 }
 0x177   : > { %vm531_vm3 = vcmp.eq.s32.totalorder %v5090_v31, %v3855_v13  ;;  %vm532_vm12 = vcmp.eq.s32.totalorder %v5090_v31, %v4134_v36  ;;  %v6090_v29 = vsel %vm5113_vm6, 4294967295, %v6089_v29  ;;  %vm574_vm9 = vmor %vm6091_vm11, %vm510_vm14  ;;  %vm858_vm11 = vcmp.eq.s32.totalorder %v4615_v50, %v4091_v22 }
 0x178   : > { %vm596_vm8 = vmor %vm420_vm15, %vm532_vm12  ;;  %vm884_vm12 = vcmp.eq.s32.totalorder %v5106_v33, %v4134_v36 }
 0x179   : > { %vm595_vm10 = vmor %vm419_vm2, %vm531_vm3 }
 0x17a   : > { %vm5124_vm15 = vmor %vm591_vm7, %vm703_vm13  ;;  %vm883_vm7 = vcmp.eq.s32.totalorder %v5106_v33, %v3855_v13 }
 0x17b   : > { %v5120_v25 = vpop.permute.xlu1 %647  ;;  %v6093_v34 = vsel %vm5124_vm15, 4294967295, %v6092_v34  ;;  %vm746_vm1 = vmor %vm6094_vm0, %vm682_vm5 }
 0x17c   : > { %vm707_vm6 = vcmp.eq.s32.totalorder %v5120_v25, %v3855_v13  ;;  %vm708_vm2 = vcmp.eq.s32.totalorder %v5120_v25, %v4134_v36  ;;  %vm5134_vm3 = vmor %vm574_vm9, %vm686_vm4 }
 0x17d   : > { %vm772_vm14 = vmor %vm596_vm8, %vm708_vm2  ;;  %vm6099_vm8 = vnez %v6090_v29 }
 0x17e   : > { %vm948_vm13 = vmor %vm772_vm14, %vm884_vm12 }
 0x17f   : > { %vm771_vm15 = vmor %vm595_vm10, %vm707_vm6  ;;  %vm862_vm6 = vcmp.eq.s32.totalorder %v4084_v20, %v4091_v22  ;;  %vm6100_vm10 = vnez %v6093_v34 }
 0x180   : > { %v5142_v44 = vpop.permute.xlu1 %820  ;;  %vm947_vm5 = vmor %vm771_vm15, %vm883_vm7  ;;  %vm505_vm7 = vcmp.eq.s32.totalorder %v4495_v54, %v4094_v23  ;;  %v5186_v54 = vpop.permute.xlu0 %474 }
 0x181   : > { %vm880_vm0 = vcmp.eq.s32.totalorder %v5142_v44, %v4134_v36  ;;  %vm879_vm4 = vcmp.eq.s32.totalorder %v5142_v44, %v3855_v13  ;;  %vm5148_vm9 = vmor %vm746_vm1, %vm858_vm11  ;;  %vm509_vm11 = vcmp.eq.s32.totalorder %v4521_v6, %v4094_v23 }
 0x182   : > { %v6098_v41 = vsel %vm5148_vm9, 4294967295, %v6097_v41  ;;  %vm944_vm12 = vmor %vm6099_vm8, %vm880_vm0  ;;  %vm681_vm0 = vcmp.eq.s32.totalorder %v4503_v57, %v4094_v23  ;;  %vm535_vm9 = vcmp.eq.s32.totalorder %v5186_v54, %v3855_v13 }
 0x183   : > { %vm2939_vm2 = vmpackc.low %vm948_vm13, %vm944_vm12  ;;  %vm397_vm13 = vcmp.eq.s32.totalorder %v4351_v63, %v4094_v23 }
 0x184   : > { %2940 = vmatprep.mubr.msk.bf16.mxu0 %vm2939_vm2, %v3671_v1  ;;  %3004 = vmatprep.mubr.msk.bf16.mxu1 %vm2939_vm2, %v3671_v1  ;;  %vm943_vm15 = vmor %vm6100_vm10, %vm879_vm4  ;;  %vm685_vm4 = vcmp.eq.s32.totalorder %v4571_v16, %v4094_v23  ;;  %vm857_vm2 = vcmp.eq.s32.totalorder %v4615_v50, %v4094_v23  ;;  %vm861_vm10 = vcmp.eq.s32.totalorder %v4084_v20, %v4094_v23  ;;  %v6105_v20 = vmov 0  ;;  %v5210_v57 = vpop.permute.xlu0 %653 }
 0x185   : > { %vm2941_vm14 = vmpackc.low %vm947_vm5, %vm943_vm15  ;;  %v5160_v56 = vpop.permute.xlu1 %362  ;;  %vm393_vm5 = vcmp.eq.s32.totalorder %v4462_v28, %v4094_v23  ;;  %vm536_vm15 = vcmp.eq.s32.totalorder %v5186_v54, %v4134_v36  ;;  %v6103_v28 = vmov 0  ;;  %v6111_v50 = vmov 0 }
 0x186   : > { %2942 = vmatmul.mubr.msk.bf16.gmra.mrb[24].mxu0 %vm2941_vm14, %v3671_v1  ;;  %3006 = vmatmul.mubr.msk.bf16.gmra.mrb[24].mxu1 %vm2941_vm14, %v3671_v1  ;;  %vm5166_vm1 = vmor %vm5134_vm3, %vm862_vm6  ;;  %vm424_vm14 = vcmp.eq.s32.totalorder %v5160_v56, %v4134_v36 }
 0x187   : > { %v6102_v59 = vsel %vm5166_vm1, 4294967295, %v6101_v59  ;;  %vm569_vm8 = vmor %vm393_vm5, %vm505_vm7  ;;  %vm423_vm7 = vcmp.eq.s32.totalorder %v5160_v56, %v3855_v13 }
 0x188   : > { %vm573_vm12 = vmor %vm397_vm13, %vm509_vm11 }
 0x189   : > { %v366_v3 = vpop.permute.xlu1 %365  ;;  %vm745_vm6 = vmor %vm569_vm8, %vm681_vm0 }
 0x18a   : > { %vm749_vm3 = vmor %vm573_vm12, %vm685_vm4  ;;  %vm429_vm8 = vcmp.eq.s32.totalorder %v366_v3, %v4094_v23  ;;  %vm428_vm1 = vcmp.eq.s32.totalorder %v366_v3, %v4134_v36 }
 0x18b   : > { %vm5200_vm13 = vmor %vm745_vm6, %vm857_vm2 }
 0x18c   : > { %v6104_v28 = vsel %vm5200_vm13, 4294967295, %v6103_v28  ;;  %vm5205_vm5 = vmor %vm749_vm3, %vm861_vm10  ;;  %vm430_vm3 = vcmp.eq.s32.totalorder %v366_v3, %v4091_v22 }
 0x18d   : > { %v6106_v20 = vsel %vm5205_vm5, 4294967295, %v6105_v20  ;;  %vm5212_vm4 = vmor %vm424_vm14, %vm536_vm15  ;;  %vm717_vm15 = vcmp.eq.s32.totalorder %v5210_v57, %v4094_v23 }
 0x18e   : > { %v478_v63 = vpop.permute.xlu1 %477  ;;  %vm5218_vm2 = vmor %vm423_vm7, %vm535_vm9  ;;  %vm427_vm9 = vcmp.eq.s32.totalorder %v366_v3, %v3855_v13  ;;  %vm716_vm7 = vcmp.eq.s32.totalorder %v5210_v57, %v4134_v36 }
 0x18f   : > { %vm541_vm11 = vcmp.eq.s32.totalorder %v478_v63, %v4094_v23  ;;  %vm542_vm0 = vcmp.eq.s32.totalorder %v478_v63, %v4091_v22  ;;  %vm540_vm12 = vcmp.eq.s32.totalorder %v478_v63, %v4134_v36  ;;  %vm539_vm6 = vcmp.eq.s32.totalorder %v478_v63, %v3855_v13 }
 0x190   : > { %vm605_vm10 = vmor %vm429_vm8, %vm541_vm11  ;;  %vm715_vm11 = vcmp.eq.s32.totalorder %v5210_v57, %v3855_v13 }
 0x191   : > { %vm5225_vm5 = vmor %vm430_vm3, %vm542_vm0 }
 0x192   : > { %v6112_v50 = vsel %vm5225_vm5, 4294967295, %v6111_v50  ;;  %vm604_vm14 = vmor %vm428_vm1, %vm540_vm12 }
 0x193   : > { %vm603_vm13 = vmor %vm427_vm9, %vm539_vm6 }
 0x194   : > { %v5231_v8 = vpop.permute.xlu1 %650  ;;  %vm5240_vm8 = vmor %vm605_vm10, %vm717_vm15  ;;  %vm514_vm10 = vcmp.eq.s32.totalorder %v4123_v32, %v4091_v22  ;;  %vm402_vm15 = vcmp.eq.s32.totalorder %v4649_v4, %v4091_v22 }
 0x195   : > { %vm712_vm0 = vcmp.eq.s32.totalorder %v5231_v8, %v4134_v36  ;;  %v6114_v9 = vsel %vm5240_vm8, 4294967295, %v6113_v9  ;;  %vm711_vm3 = vcmp.eq.s32.totalorder %v5231_v8, %v3855_v13  ;;  %vm5246_vm5 = vmor %vm604_vm14, %vm716_vm7 }
 0x196   : > { %vm5250_vm1 = vmor %vm603_vm13, %vm715_vm11 }
 0x197   : > { %vm776_vm12 = vmor %vm5212_vm4, %vm712_vm0  ;;  %vm409_vm4 = vcmp.eq.s32.totalorder %v4403_v10, %v4094_v23 }
 0x198   : > { %vm775_vm6 = vmor %vm5218_vm2, %vm711_vm3  ;;  %vm518_vm2 = vcmp.eq.s32.totalorder %v4711_v24, %v4091_v22  ;;  %vm406_vm3 = vcmp.eq.s32.totalorder %v4670_v19, %v4091_v22 }
 0x199   : > { %v5256_v47 = vpop.permute.xlu1 %826  ;;  %vm5282_vm8 = vmor %vm402_vm15, %vm514_vm10  ;;  %vm694_vm15 = vcmp.eq.s32.totalorder %v4725_v40, %v4091_v22 }
 0x19a   : > { %vm888_vm13 = vcmp.eq.s32.totalorder %v5256_v47, %v4134_v36  ;;  %vm887_vm9 = vcmp.eq.s32.totalorder %v5256_v47, %v3855_v13 }
 0x19b   : > { %vm952_vm11 = vmor %vm776_vm12, %vm888_vm13  ;;  %vm690_vm13 = vcmp.eq.s32.totalorder %v4775_v61, %v4091_v22 }
 0x19c   : > { %vm5274_vm0 = vmor %vm775_vm6, %vm887_vm9 }
 0x19d   : > { %vm5290_vm12 = vmor %vm406_vm3, %vm518_vm2  ;;  %vm6127_vm3 = vnez %v6021_v2  ;;  %v6186_v2 = vmov 0 }
 0x1a0   : > { %v5280_v11 = vpop.permute.xlu1 %829 }
 0x1a1   : > { %vm891_vm7 = vcmp.eq.s32.totalorder %v5280_v11, %v3855_v13  ;;  %vm892_vm14 = vcmp.eq.s32.totalorder %v5280_v11, %v4134_v36  ;;  %v6131_v13 = vmov 0  ;;  %v6133_v36 = vmov 0 }
 0x1a2   : > { %vm956_vm6 = vmor %vm5246_vm5, %vm892_vm14  ;;  %vm866_vm5 = vcmp.eq.s32.totalorder %v4837_v58, %v4091_v22 }
 0x1a3   : > { %vm2943_vm10 = vmpackc.low %vm956_vm6, %vm952_vm11  ;;  %vm870_vm11 = vcmp.eq.s32.totalorder %v4879_v39, %v4091_v22  ;;  %vm513_vm6 = vcmp.eq.s32.totalorder %v4123_v32, %v4094_v23  ;;  %v6143_v32 = vmov 0 }
 0x1a4   : > { %2944 = vmatprep.mubr.msk.bf16.mxu0 %vm2943_vm10, %v3671_v1  ;;  %3008 = vmatprep.mubr.msk.bf16.mxu1 %vm2943_vm10, %v3671_v1  ;;  %vm955_vm9 = vmor %vm5250_vm1, %vm891_vm7  ;;  %vm6128_vm1 = vnez %v6019_v30  ;;  %v6173_v30 = vmov 0 }
 0x1a5   : > { %vm2945_vm2 = vmpackc.low %vm955_vm9, %vm5274_vm0  ;;  %vm517_vm9 = vcmp.eq.s32.totalorder %v4711_v24, %v4094_v23 }
 0x1a6   : > { %2946 = vmatmul.mubr.msk.bf16.gmra.mrb[28].mxu0 %vm2945_vm2, %v3671_v1  ;;  %3010 = vmatmul.mubr.msk.bf16.gmra.mrb[28].mxu1 %vm2945_vm2, %v3671_v1  ;;  %vm754_vm14 = vmor %vm5282_vm8, %vm690_vm13  ;;  %vm401_vm13 = vcmp.eq.s32.totalorder %v4649_v4, %v4094_v23  ;;  %v6159_v4 = vmov 0 }
 0x1a7   : > { %vm6129_vm7 = vmpackc.low %vm6127_vm3, %vm6128_vm1 }
 0x1a8   : > { %2948 = vmatprep.mubr.msk.bf16.mxu0 %vm6129_vm7, %v3671_v1  ;;  %vm6130_vm0 = vmmov %vm6129_vm7 }
 0x1a9   : > { %3012 = vmatprep.mubr.msk.bf16.mxu1 %vm6130_vm0, %v3671_v1  ;;  %vm758_vm8 = vmor %vm5290_vm12, %vm694_vm15  ;;  %vm689_vm12 = vcmp.eq.s32.totalorder %v4775_v61, %v4094_v23  ;;  %vm869_vm0 = vcmp.eq.s32.totalorder %v4879_v39, %v4094_v23  ;;  %vm6136_vm15 = vnez %v5967_v42  ;;  %v6145_v42 = vmov 0 }
 0x1aa   : > { %vm5332_vm10 = vmor %vm754_vm14, %vm866_vm5  ;;  %vm405_vm5 = vcmp.eq.s32.totalorder %v4670_v19, %v4094_v23  ;;  %vm693_vm14 = vcmp.eq.s32.totalorder %v4725_v40, %v4094_v23  ;;  %v6171_v19 = vmov 0 }
 0x1ab   : > { %v6132_v13 = vsel %vm5332_vm10, 4294967295, %v6131_v13  ;;  %vm5338_vm2 = vmor %vm758_vm8, %vm870_vm11  ;;  %vm865_vm11 = vcmp.eq.s32.totalorder %v4837_v58, %v4094_v23  ;;  %vm6135_vm8 = vnez %v5979_v52  ;;  %v6151_v52 = vmov 0 }
 0x1ac   : > { %v6134_v36 = vsel %vm5338_vm2, 4294967295, %v6133_v36  ;;  %vm577_vm3 = vmor %vm401_vm13, %vm513_vm6 }
 0x1ad   : > { %vm581_vm1 = vmor %vm405_vm5, %vm517_vm9  ;;  %vm410_vm9 = vcmp.eq.s32.totalorder %v4403_v10, %v4091_v22  ;;  %vm6139_vm5 = vnez %v6029_v49  ;;  %v6157_v10 = vmov 0 }
 0x1ae   : > { %vm753_vm7 = vmor %vm577_vm3, %vm689_vm12  ;;  %vm522_vm12 = vcmp.eq.s32.totalorder %v4940_v7, %v4091_v22  ;;  %vm6140_vm3 = vnez %v6026_v55 }
 0x1af   : > { %vm6137_vm10 = vmpackc.low %vm6135_vm8, %vm6136_vm15 }
 0x1b0   : > { %2950 = vmatmul.mubr.msk.bf16.vlgmr.msra.gmra.mrb[0].mxu0 %vm6137_vm10, %v3671_v1  ;;  %vm6138_vm6 = vmmov %vm6137_vm10 }
 0x1b1   : > { %3014 = vmatmul.mubr.msk.bf16.vlgmr.msra.gmra.mrb[0].mxu1 %vm6138_vm6, %v3671_v1  ;;  %vm757_vm13 = vmor %vm581_vm1, %vm693_vm14  ;;  %vm414_vm1 = vcmp.eq.s32.totalorder %v4911_v26, %v4091_v22  ;;  %vm698_vm6 = vcmp.eq.s32.totalorder %v4972_v46, %v4091_v22 }
 0x1b2   : > { %vm6141_vm10 = vmpackc.low %vm6139_vm5, %vm6140_vm3  ;;  %vm521_vm5 = vcmp.eq.s32.totalorder %v4940_v7, %v4094_v23 }
 0x1b3   : > { %2952 = vmatprep.mubr.msk.bf16.mxu0 %vm6141_vm10, %v3671_v1  ;;  %vm6142_vm15 = vmmov %vm6141_vm10 }
 0x1b4   : > { %3016 = vmatprep.mubr.msk.bf16.mxu1 %vm6142_vm15, %v3671_v1  ;;  %vm5384_vm14 = vmor %vm753_vm7, %vm865_vm11  ;;  %vm526_vm11 = vcmp.eq.s32.totalorder %v4131_v35, %v4091_v22  ;;  %vm702_vm7 = vcmp.eq.s32.totalorder %v4994_v18, %v4091_v22  ;;  %vm878_vm15 = vcmp.eq.s32.totalorder %v5020_v60, %v4091_v22 }
 0x1b5   : > { %v6144_v32 = vsel %vm5384_vm14, 4294967295, %v6143_v32  ;;  %vm5390_vm8 = vmor %vm757_vm13, %vm869_vm0  ;;  %vm874_vm0 = vcmp.eq.s32.totalorder %v4952_v14, %v4091_v22  ;;  %vm6147_vm14 = vnez %v6062_v51 }
 0x1b6   : > { %v6146_v42 = vsel %vm5390_vm8, 4294967295, %v6145_v42  ;;  %vm586_vm3 = vmor %vm410_vm9, %vm522_vm12  ;;  %vm6148_vm9 = vnez %v6060_v38  ;;  %vm530_vm8 = vcmp.eq.s32.totalorder %v5068_v0, %v4091_v22 }
 0x1b7   : > { %vm590_vm10 = vmor %vm414_vm1, %vm526_vm11  ;;  %vm413_vm11 = vcmp.eq.s32.totalorder %v4911_v26, %v4094_v23 }
 0x1b8   : > { %vm762_vm13 = vmor %vm586_vm3, %vm698_vm6  ;;  %vm6154_vm3 = vnez %v6070_v15 }
 0x1b9   : > { %vm766_vm2 = vmor %vm590_vm10, %vm702_vm7  ;;  %vm6153_vm7 = vnez %v6072_v5 }
 0x1ba   : > { %vm6149_vm12 = vmpackc.low %vm6147_vm14, %vm6148_vm9 }
 0x1bb   : > { %2954 = vmatmul.mubr.msk.bf16.gmra.mrb[4].mxu0 %vm6149_vm12, %v3671_v1  ;;  %vm6150_vm1 = vmmov %vm6149_vm12  ;;  %vm525_vm12 = vcmp.eq.s32.totalorder %v4131_v35, %v4094_v23  ;;  %v6165_v35 = vmov 0 }
 0x1bc   : > { %3018 = vmatmul.mubr.msk.bf16.gmra.mrb[4].mxu1 %vm6150_vm1, %v3671_v1  ;;  %vm5424_vm6 = vmor %vm762_vm13, %vm874_vm0  ;;  %vm697_vm13 = vcmp.eq.s32.totalorder %v4972_v46, %v4094_v23  ;;  %vm701_vm1 = vcmp.eq.s32.totalorder %v4994_v18, %v4094_v23 }
 0x1bd   : > { %v6152_v52 = vsel %vm5424_vm6, 4294967295, %v6151_v52  ;;  %vm6155_vm10 = vmpackc.low %vm6153_vm7, %vm6154_vm3  ;;  %vm534_vm6 = vcmp.eq.s32.totalorder %v5090_v31, %v4091_v22 }
 0x1be   : > { %2956 = vmatprep.mubr.msk.bf16.mxu0 %vm6155_vm10, %v3671_v1  ;;  %vm6156_vm14 = vmmov %vm6155_vm10  ;;  %vm877_vm10 = vcmp.eq.s32.totalorder %v5020_v60, %v4094_v23 }
 0x1bf   : > { %3020 = vmatprep.mubr.msk.bf16.mxu1 %vm6156_vm14, %v3671_v1  ;;  %vm5442_vm0 = vmor %vm766_vm2, %vm878_vm15  ;;  %vm873_vm2 = vcmp.eq.s32.totalorder %v4952_v14, %v4094_v23 }
 0x1c0   : > { %v6158_v10 = vsel %vm5442_vm0, 4294967295, %v6157_v10  ;;  %vm585_vm7 = vmor %vm409_vm4, %vm521_vm5  ;;  %vm6161_vm4 = vnez %v6085_v17  ;;  %vm6162_vm5 = vnez %v6083_v62 }
 0x1c1   : > { %vm589_vm3 = vmor %vm413_vm11, %vm525_vm12 }
 0x1c2   : > { %vm761_vm15 = vmor %vm585_vm7, %vm697_vm13  ;;  %vm418_vm7 = vcmp.eq.s32.totalorder %v5044_v53, %v4091_v22 }
 0x1c3   : > { %vm765_vm14 = vmor %vm589_vm3, %vm701_vm1  ;;  %vm706_vm1 = vcmp.eq.s32.totalorder %v4920_v45, %v4091_v22  ;;  %vm6167_vm3 = vnez %v6102_v59 }
 0x1c4   : > { %vm5462_vm9 = vmor %vm761_vm15, %vm873_vm2  ;;  %vm6168_vm2 = vnez %v6098_v41 }
 0x1c5   : > { %v6160_v4 = vsel %vm5462_vm9, 4294967295, %v6159_v4  ;;  %vm6163_vm11 = vmpackc.low %vm6161_vm4, %vm6162_vm5  ;;  %vm422_vm4 = vcmp.eq.s32.totalorder %v4464_v43, %v4091_v22  ;;  %vm710_vm5 = vcmp.eq.s32.totalorder %v5120_v25, %v4091_v22  ;;  %vm533_vm9 = vcmp.eq.s32.totalorder %v5090_v31, %v4094_v23 }
 0x1c6   : > { %2958 = vmatmul.mubr.msk.bf16.gmra.mrb[8].mxu0 %vm6163_vm11, %v3671_v1  ;;  %vm6164_vm13 = vmmov %vm6163_vm11 }
 0x1c7   : > { %3022 = vmatmul.mubr.msk.bf16.gmra.mrb[8].mxu1 %vm6164_vm13, %v3671_v1  ;;  %vm5480_vm12 = vmor %vm765_vm14, %vm877_vm10 }
 0x1c8   : > { %v6166_v35 = vsel %vm5480_vm12, 4294967295, %v6165_v35  ;;  %vm6169_vm15 = vmpackc.low %vm6167_vm3, %vm6168_vm2  ;;  %vm886_vm3 = vcmp.eq.s32.totalorder %v5106_v33, %v4091_v22 }
 0x1c9   : > { %2960 = vmatprep.mubr.msk.bf16.mxu0 %vm6169_vm15, %v3671_v1  ;;  %vm6170_vm10 = vmmov %vm6169_vm15  ;;  %vm882_vm15 = vcmp.eq.s32.totalorder %v5142_v44, %v4091_v22 }
 0x1ca   : > { %3024 = vmatprep.mubr.msk.bf16.mxu1 %vm6170_vm10, %v3671_v1  ;;  %vm594_vm11 = vmor %vm418_vm7, %vm530_vm8  ;;  %vm529_vm10 = vcmp.eq.s32.totalorder %v5068_v0, %v4094_v23  ;;  %vm718_vm8 = vcmp.eq.s32.totalorder %v5210_v57, %v4091_v22  ;;  %vm417_vm7 = vcmp.eq.s32.totalorder %v5044_v53, %v4094_v23 }
 0x1cb   : > { %vm598_vm13 = vmor %vm422_vm4, %vm534_vm6  ;;  %vm6176_vm4 = vnez %v6104_v28 }
 0x1cc   : > { %vm770_vm0 = vmor %vm594_vm11, %vm706_vm1  ;;  %vm705_vm1 = vcmp.eq.s32.totalorder %v4920_v45, %v4094_v23 }
 0x1cd   : > { %vm774_vm2 = vmor %vm598_vm13, %vm710_vm5 }
 0x1ce   : > { %vm5514_vm14 = vmor %vm770_vm0, %vm882_vm15  ;;  %vm6175_vm0 = vnez %v6106_v20  ;;  %vm421_vm15 = vcmp.eq.s32.totalorder %v4464_v43, %v4094_v23 }
 0x1cf   : > { %v6172_v19 = vsel %vm5514_vm14, 4294967295, %v6171_v19  ;;  %vm5522_vm6 = vmor %vm774_vm2, %vm886_vm3  ;;  %vm709_vm3 = vcmp.eq.s32.totalorder %v5120_v25, %v4094_v23  ;;  %vm6179_vm2 = vnez %v6134_v36 }
 0x1d0   : > { %v6174_v30 = vsel %vm5522_vm6, 4294967295, %v6173_v30  ;;  %vm6177_vm5 = vmpackc.low %vm6175_vm0, %vm6176_vm4  ;;  %vm881_vm6 = vcmp.eq.s32.totalorder %v5142_v44, %v4094_v23 }
 0x1d1   : > { %2962 = vmatmul.mubr.msk.bf16.gmra.mrb[12].mxu0 %vm6177_vm5, %v3671_v1  ;;  %vm6178_vm11 = vmmov %vm6177_vm5  ;;  %vm6180_vm5 = vnez %v6132_v13 }
 0x1d2   : > { %3026 = vmatmul.mubr.msk.bf16.gmra.mrb[12].mxu1 %vm6178_vm11, %v3671_v1  ;;  %vm6181_vm12 = vmpackc.low %vm6179_vm2, %vm6180_vm5  ;;  %vm6183_vm11 = vnez %v6112_v50  ;;  %vm885_vm2 = vcmp.eq.s32.totalorder %v5106_v33, %v4094_v23 }
 0x1d3   : > { %2964 = vmatprep.mubr.msk.bf16.mxu0 %vm6181_vm12, %v3671_v1  ;;  %vm6182_vm0 = vmmov %vm6181_vm12 }
 0x1d4   : > { %3028 = vmatprep.mubr.msk.bf16.mxu1 %vm6182_vm0, %v3671_v1  ;;  %vm593_vm4 = vmor %vm417_vm7, %vm529_vm10  ;;  %vm538_vm0 = vcmp.eq.s32.totalorder %v5186_v54, %v4091_v22  ;;  %vm426_vm10 = vcmp.eq.s32.totalorder %v5160_v56, %v4091_v22 }
 0x1d5   : > { %vm5564_vm13 = vmor %vm6183_vm11, %vm718_vm8 }
 0x1d6   : > { %vm597_vm14 = vmor %vm421_vm15, %vm533_vm9  ;;  %vm714_vm9 = vcmp.eq.s32.totalorder %v5231_v8, %v4091_v22  ;;  %vm6190_vm15 = vnez %v6146_v42 }
 0x1d7   : > { %vm769_vm12 = vmor %vm593_vm4, %vm705_vm1  ;;  %vm890_vm1 = vcmp.eq.s32.totalorder %v5256_v47, %v4091_v22 }
 0x1d8   : > { %vm773_vm5 = vmor %vm597_vm14, %vm709_vm3  ;;  %vm6191_vm3 = vnez %v6144_v32 }
 0x1d9   : > { %vm5576_vm7 = vmor %vm769_vm12, %vm881_vm6  ;;  %vm894_vm6 = vcmp.eq.s32.totalorder %v5280_v11, %v4091_v22 }
 0x1da   : > { %v6187_v2 = vsel %vm5576_vm7, 4294967295, %v6186_v2  ;;  %vm5582_vm8 = vmor %vm773_vm5, %vm885_vm2  ;;  %vm6194_vm2 = vnez %v6158_v10  ;;  %vm6195_vm5 = vnez %v6152_v52 }
 0x1db   : > { %vm6192_vm4 = vmpackc.low %vm6190_vm15, %vm6191_vm3  ;;  %vm537_vm15 = vcmp.eq.s32.totalorder %v5186_v54, %v4094_v23 }
 0x1dc   : > { %2966 = vmatmul.mubr.msk.bf16.gmra.mrb[16].mxu0 %vm6192_vm4, %v3671_v1  ;;  %vm6193_vm11 = vmmov %vm6192_vm4 }
 0x1dd   : > { %3030 = vmatmul.mubr.msk.bf16.gmra.mrb[16].mxu1 %vm6193_vm11, %v3671_v1  ;;  %vm602_vm12 = vmor %vm426_vm10, %vm538_vm0  ;;  %vm425_vm0 = vcmp.eq.s32.totalorder %v5160_v56, %v4094_v23 }
 0x1de   : > { %vm6196_vm14 = vmpackc.low %vm6194_vm2, %vm6195_vm5 }
 0x1df   : > { %2968 = vmatprep.mubr.msk.bf16.mxu0 %vm6196_vm14, %v3671_v1  ;;  %vm6197_vm4 = vmmov %vm6196_vm14  ;;  %vm713_vm14 = vcmp.eq.s32.totalorder %v5231_v8, %v4094_v23 }
 0x1e0   : > { %3032 = vmatprep.mubr.msk.bf16.mxu1 %vm6197_vm4, %v3671_v1  ;;  %vm778_vm7 = vmor %vm602_vm12, %vm714_vm9 }
 0x1e1   : > { %vm5622_vm10 = vmor %vm778_vm7, %vm890_vm1  ;;  %vm889_vm7 = vcmp.eq.s32.totalorder %v5256_v47, %v4094_v23  ;;  %vm893_vm1 = vcmp.eq.s32.totalorder %v5280_v11, %v4094_v23 }
 0x1e2   : > { %vm5630_vm3 = vmor %vm5564_vm13, %vm894_vm6  ;;  %vm6202_vm13 = vnez %v6166_v35  ;;  %vm6203_vm6 = vnez %v6160_v4 }
 0x1e3   : > { %vm2975_vm9 = vmpackc.low %vm5630_vm3, %vm5622_vm10  ;;  %vm6206_vm10 = vnez %v6114_v9 }
 0x1e4   : > { %vm601_vm11 = vmor %vm425_vm0, %vm537_vm15  ;;  %vm6207_vm0 = vnez %v6174_v30 }
 0x1e5   : > { %vm777_vm12 = vmor %vm601_vm11, %vm713_vm14  ;;  %vm6208_vm14 = vnez %v6172_v19 }
 0x1e6   : > { %vm953_vm2 = vmor %vm777_vm12, %vm889_vm7 }
 0x1e7   : > { %vm6204_vm5 = vmpackc.low %vm6202_vm13, %vm6203_vm6 }
 0x1e8   : > { %2970 = vmatmul.mubr.msk.bf16.gmra.mrb[20].mxu0 %vm6204_vm5, %v3671_v1  ;;  %vm6205_vm4 = vmmov %vm6204_vm5 }
 0x1e9   : > { %3034 = vmatmul.mubr.msk.bf16.gmra.mrb[20].mxu1 %vm6205_vm4, %v3671_v1  ;;  %vm957_vm15 = vmor %vm6206_vm10, %vm893_vm1  ;;  %vm6211_vm1 = vnez %v6187_v2 }
 0x1ea   : > { %vm6209_vm3 = vmpackc.low %vm6207_vm0, %vm6208_vm14 }
 0x1eb   : > { %2972 = vmatprep.mubr.msk.bf16.mxu0 %vm6209_vm3, %v3671_v1  ;;  %vm6210_vm7 = vmmov %vm6209_vm3 }
 0x1ec   : > { %3036 = vmatprep.mubr.msk.bf16.mxu1 %vm6210_vm7, %v3671_v1  ;;  %vm2977_vm11 = vmpackc.low %vm957_vm15, %vm953_vm2 }
 0x1ed   : > { %vm6212_vm12 = vmpackc.low %vm5582_vm8, %vm6211_vm1 }
 0x1ee   : > { %vm6213_vm13 = vmmov %vm6212_vm12 }
 0x1f0   : > { %2974 = vmatmul.mubr.msk.bf16.gmra.mrb[24].mxu0 %vm6212_vm12, %v3671_v1 }
 0x1f1   : > { %3038 = vmatmul.mubr.msk.bf16.gmra.mrb[24].mxu1 %vm6213_vm13, %v3671_v1  ;;  %2976 = vmatprep.mubr.msk.bf16.mxu0 %vm2975_vm9, %v3671_v1 }
 0x1f2   : > { %3040 = vmatprep.mubr.msk.bf16.mxu1 %vm2975_vm9, %v3671_v1 }
 0x1f8   : > { %2978 = vmatmul.mubr.msk.bf16.gmra.mrb[28].mxu0 %vm2977_vm11, %v3671_v1 }
 0x1f9   : > { %3042 = vmatmul.mubr.msk.bf16.gmra.mrb[28].mxu1 %vm2977_vm11, %v3671_v1 }
 0x283   : > { %v2034_v23 = vpop.f32.mrb[0].mxu0 }
 0x284   : > { %v2260_v40 = vpop.f32.mrb[0].mxu1  ;;  %v2339_v49 = vmul.f32 2.0, %v2034_v23  ;;  %v2036_v58 = vpop.f32.mrb[1].mxu0 }
 0x285   : > { %v2341_v61 = vmul.f32 2.0, %v2260_v40  ;;  %v2262_v39 = vpop.f32.mrb[1].mxu1  ;;  %v2340_v38 = vmul.f32 2.0, %v2036_v58  ;;  %v2038_v26 = vpop.f32.mrb[2].mxu0 }
 0x286   : > { %v2342_v51 = vmul.f32 2.0, %v2262_v39  ;;  %v2264_v45 = vpop.f32.mrb[2].mxu1  ;;  %vm2403_vm8 = vcmp.gt.f32.partialorder %v2339_v49, 4.0  ;;  %v2343_v7 = vmul.f32 2.0, %v2038_v26  ;;  %v2040_v46 = vpop.f32.mrb[3].mxu0 }
 0x287   : > { %vm2405_vm2 = vcmp.gt.f32.partialorder %v2341_v61, 4.0  ;;  %v2345_v14 = vmul.f32 2.0, %v2264_v45  ;;  %v2266_v15 = vpop.f32.mrb[3].mxu1  ;;  %v2467_v1 = vsel %vm2403_vm8, 1, %v3670_v48  ;;  %vm2404_vm9 = vcmp.gt.f32.partialorder %v2340_v38, 4.0 }
 0x288   : > { %v2469_v5 = vsel %vm2405_vm2, 1, %v3670_v48  ;;  %vm2406_vm6 = vcmp.gt.f32.partialorder %v2342_v51, 4.0  ;;  %2531 = vst [vmem:[%s5689_s20] sm:$0xff] %v2467_v1  ;;  %v2468_v18 = vsel %vm2404_vm9, 1, %v3670_v48  ;;  %vm2407_vm5 = vcmp.gt.f32.partialorder %v2343_v7, 4.0 }
 0x289   : > { %2533 = vst [vmem:[%s5689_s20 + $0x10] sm:$0xff] %v2469_v5  ;;  %v2470_v60 = vsel %vm2406_vm6, 1, %v3670_v48  ;;  %vm2409_vm4 = vcmp.gt.f32.partialorder %v2345_v14, 4.0  ;;  %2532 = vst [vmem:[%s5689_s20 + $0x8] sm:$0xff] %v2468_v18  ;;  %v2471_v53 = vsel %vm2407_vm5, 1, %v3670_v48  ;;  %v2344_v17 = vmul.f32 2.0, %v2040_v46 }
 0x28a   : > { %2534 = vst [vmem:[%s5689_s20 + $0x18] sm:$0xff] %v2470_v60  ;;  %v2473_v62 = vsel %vm2409_vm4, 1, %v3670_v48  ;;  %v2346_v0 = vmul.f32 2.0, %v2266_v15  ;;  %2535 = vst [vmem:[%s5689_s20 + $0x20] sm:$0xff] %v2471_v53 }
 0x28b   : > { %2537 = vst [vmem:[%s5689_s20 + $0x30] sm:$0xff] %v2473_v62  ;;  %vm2408_vm10 = vcmp.gt.f32.partialorder %v2344_v17, 4.0 }
 0x28c   : > { %vm2410_vm15 = vcmp.gt.f32.partialorder %v2346_v0, 4.0  ;;  %v2472_v25 = vsel %vm2408_vm10, 1, %v3670_v48 }
 0x28d   : > { %v2474_v37 = vsel %vm2410_vm15, 1, %v3670_v48  ;;  %2536 = vst [vmem:[%s5689_s20 + $0x28] sm:$0xff] %v2472_v25 }
 0x28e   : > { %v2044_v31 = vpop.f32.mrb[4].mxu0  ;;  %2538 = vst [vmem:[%s5689_s20 + $0x38] sm:$0xff] %v2474_v37 }
 0x28f   : > { %v2270_v33 = vpop.f32.mrb[4].mxu1  ;;  %v2347_v44 = vmul.f32 2.0, %v2044_v31  ;;  %v2046_v56 = vpop.f32.mrb[5].mxu0 }
 0x290   : > { %v2349_v41 = vmul.f32 2.0, %v2270_v33  ;;  %v2272_v59 = vpop.f32.mrb[5].mxu1  ;;  %v2348_v3 = vmul.f32 2.0, %v2046_v56  ;;  %v2048_v63 = vpop.f32.mrb[6].mxu0 }
 0x291   : > { %v2350_v54 = vmul.f32 2.0, %v2272_v59  ;;  %v2274_v28 = vpop.f32.mrb[6].mxu1  ;;  %vm2411_vm0 = vcmp.gt.f32.partialorder %v2347_v44, 4.0  ;;  %v2351_v20 = vmul.f32 2.0, %v2048_v63  ;;  %v2050_v6 = vpop.f32.mrb[7].mxu0 }
 0x292   : > { %vm2413_vm14 = vcmp.gt.f32.partialorder %v2349_v41, 4.0  ;;  %v2353_v57 = vmul.f32 2.0, %v2274_v28  ;;  %v2276_v16 = vpop.f32.mrb[7].mxu1  ;;  %v2475_v50 = vsel %vm2411_vm0, 1, %v3670_v48  ;;  %vm2412_vm3 = vcmp.gt.f32.partialorder %v2348_v3, 4.0 }
 0x293   : > { %v2477_v8 = vsel %vm2413_vm14, 1, %v3670_v48  ;;  %vm2414_vm7 = vcmp.gt.f32.partialorder %v2350_v54, 4.0  ;;  %2539 = vst [vmem:[%s5689_s20 + $0x40] sm:$0xff] %v2475_v50  ;;  %v2476_v9 = vsel %vm2412_vm3, 1, %v3670_v48  ;;  %vm2415_vm11 = vcmp.gt.f32.partialorder %v2351_v20, 4.0 }
 0x294   : > { %2541 = vst [vmem:[%s5689_s20 + $0x50] sm:$0xff] %v2477_v8  ;;  %v2478_v12 = vsel %vm2414_vm7, 1, %v3670_v48  ;;  %vm2417_vm1 = vcmp.gt.f32.partialorder %v2353_v57, 4.0  ;;  %2540 = vst [vmem:[%s5689_s20 + $0x48] sm:$0xff] %v2476_v9  ;;  %v2479_v21 = vsel %vm2415_vm11, 1, %v3670_v48  ;;  %v2352_v27 = vmul.f32 2.0, %v2050_v6 }
 0x295   : > { %2542 = vst [vmem:[%s5689_s20 + $0x58] sm:$0xff] %v2478_v12  ;;  %v2481_v47 = vsel %vm2417_vm1, 1, %v3670_v48  ;;  %v2354_v11 = vmul.f32 2.0, %v2276_v16  ;;  %2543 = vst [vmem:[%s5689_s20 + $0x60] sm:$0xff] %v2479_v21 }
 0x296   : > { %2545 = vst [vmem:[%s5689_s20 + $0x70] sm:$0xff] %v2481_v47  ;;  %vm2416_vm12 = vcmp.gt.f32.partialorder %v2352_v27, 4.0 }
 0x297   : > { %vm2418_vm13 = vcmp.gt.f32.partialorder %v2354_v11, 4.0  ;;  %v2480_v13 = vsel %vm2416_vm12, 1, %v3670_v48 }
 0x298   : > { %v2482_v36 = vsel %vm2418_vm13, 1, %v3670_v48  ;;  %2544 = vst [vmem:[%s5689_s20 + $0x68] sm:$0xff] %v2480_v13 }
 0x299   : > { %v2054_v29 = vpop.f32.mrb[8].mxu0  ;;  %2546 = vst [vmem:[%s5689_s20 + $0x78] sm:$0xff] %v2482_v36 }
 0x29a   : > { %v2280_v34 = vpop.f32.mrb[8].mxu1  ;;  %v2355_v32 = vmul.f32 2.0, %v2054_v29  ;;  %v2056_v52 = vpop.f32.mrb[9].mxu0 }
 0x29b   : > { %v2357_v42 = vmul.f32 2.0, %v2280_v34  ;;  %v2282_v10 = vpop.f32.mrb[9].mxu1  ;;  %v2356_v4 = vmul.f32 2.0, %v2056_v52  ;;  %v2058_v19 = vpop.f32.mrb[10].mxu0 }
 0x29c   : > { %v2358_v35 = vmul.f32 2.0, %v2282_v10  ;;  %v2284_v30 = vpop.f32.mrb[10].mxu1  ;;  %vm2419_vm8 = vcmp.gt.f32.partialorder %v2355_v32, 4.0  ;;  %v2359_v43 = vmul.f32 2.0, %v2058_v19  ;;  %v2060_v24 = vpop.f32.mrb[11].mxu0 }
 0x29d   : > { %vm2421_vm2 = vcmp.gt.f32.partialorder %v2357_v42, 4.0  ;;  %v2361_v2 = vmul.f32 2.0, %v2284_v30  ;;  %v2286_v22 = vpop.f32.mrb[11].mxu1  ;;  %v2483_v55 = vsel %vm2419_vm8, 1, %v3670_v48  ;;  %vm2420_vm9 = vcmp.gt.f32.partialorder %v2356_v4, 4.0 }
 0x29e   : > { %v2485_v23 = vsel %vm2421_vm2, 1, %v3670_v48  ;;  %vm2422_vm6 = vcmp.gt.f32.partialorder %v2358_v35, 4.0  ;;  %2547 = vst [vmem:[%s5689_s20 + $0x80] sm:$0xff] %v2483_v55  ;;  %v2484_v40 = vsel %vm2420_vm9, 1, %v3670_v48  ;;  %vm2423_vm5 = vcmp.gt.f32.partialorder %v2359_v43, 4.0 }
 0x29f   : > { %2549 = vst [vmem:[%s5689_s20 + $0x90] sm:$0xff] %v2485_v23  ;;  %v2486_v49 = vsel %vm2422_vm6, 1, %v3670_v48  ;;  %vm2425_vm4 = vcmp.gt.f32.partialorder %v2361_v2, 4.0  ;;  %2548 = vst [vmem:[%s5689_s20 + $0x88] sm:$0xff] %v2484_v40  ;;  %v2487_v61 = vsel %vm2423_vm5, 1, %v3670_v48  ;;  %v2360_v39 = vmul.f32 2.0, %v2060_v24 }
 0x2a0   : > { %2550 = vst [vmem:[%s5689_s20 + $0x98] sm:$0xff] %v2486_v49  ;;  %v2489_v58 = vsel %vm2425_vm4, 1, %v3670_v48  ;;  %v2362_v38 = vmul.f32 2.0, %v2286_v22  ;;  %2551 = vst [vmem:[%s5689_s20 + $0xa0] sm:$0xff] %v2487_v61 }
 0x2a1   : > { %2553 = vst [vmem:[%s5689_s20 + $0xb0] sm:$0xff] %v2489_v58  ;;  %vm2424_vm10 = vcmp.gt.f32.partialorder %v2360_v39, 4.0 }
 0x2a2   : > { %vm2426_vm15 = vcmp.gt.f32.partialorder %v2362_v38, 4.0  ;;  %v2488_v45 = vsel %vm2424_vm10, 1, %v3670_v48 }
 0x2a3   : > { %v2490_v7 = vsel %vm2426_vm15, 1, %v3670_v48  ;;  %2552 = vst [vmem:[%s5689_s20 + $0xa8] sm:$0xff] %v2488_v45 }
 0x2a4   : > { %v2064_v51 = vpop.f32.mrb[12].mxu0  ;;  %2554 = vst [vmem:[%s5689_s20 + $0xb8] sm:$0xff] %v2490_v7 }
 0x2a5   : > { %v2290_v26 = vpop.f32.mrb[12].mxu1  ;;  %v2363_v14 = vmul.f32 2.0, %v2064_v51  ;;  %v2066_v15 = vpop.f32.mrb[13].mxu0 }
 0x2a6   : > { %v2365_v46 = vmul.f32 2.0, %v2290_v26  ;;  %v2292_v1 = vpop.f32.mrb[13].mxu1  ;;  %v2364_v5 = vmul.f32 2.0, %v2066_v15  ;;  %v2068_v60 = vpop.f32.mrb[14].mxu0 }
 0x2a7   : > { %v2366_v18 = vmul.f32 2.0, %v2292_v1  ;;  %v2294_v53 = vpop.f32.mrb[14].mxu1  ;;  %vm2427_vm0 = vcmp.gt.f32.partialorder %v2363_v14, 4.0  ;;  %v2367_v62 = vmul.f32 2.0, %v2068_v60  ;;  %v2070_v0 = vpop.f32.mrb[15].mxu0 }
 0x2a8   : > { %vm2429_vm14 = vcmp.gt.f32.partialorder %v2365_v46, 4.0  ;;  %v2369_v17 = vmul.f32 2.0, %v2294_v53  ;;  %v2296_v31 = vpop.f32.mrb[15].mxu1  ;;  %v2491_v33 = vsel %vm2427_vm0, 1, %v3670_v48  ;;  %vm2428_vm3 = vcmp.gt.f32.partialorder %v2364_v5, 4.0 }
 0x2a9   : > { %v2493_v25 = vsel %vm2429_vm14, 1, %v3670_v48  ;;  %vm2430_vm7 = vcmp.gt.f32.partialorder %v2366_v18, 4.0  ;;  %2555 = vst [vmem:[%s5689_s20 + $0xc0] sm:$0xff] %v2491_v33  ;;  %v2492_v37 = vsel %vm2428_vm3, 1, %v3670_v48  ;;  %vm2431_vm11 = vcmp.gt.f32.partialorder %v2367_v62, 4.0 }
 0x2aa   : > { %2557 = vst [vmem:[%s5689_s20 + $0xd0] sm:$0xff] %v2493_v25  ;;  %v2494_v44 = vsel %vm2430_vm7, 1, %v3670_v48  ;;  %vm2433_vm1 = vcmp.gt.f32.partialorder %v2369_v17, 4.0  ;;  %2556 = vst [vmem:[%s5689_s20 + $0xc8] sm:$0xff] %v2492_v37  ;;  %v2495_v41 = vsel %vm2431_vm11, 1, %v3670_v48  ;;  %v2368_v59 = vmul.f32 2.0, %v2070_v0 }
 0x2ab   : > { %2558 = vst [vmem:[%s5689_s20 + $0xd8] sm:$0xff] %v2494_v44  ;;  %v2497_v56 = vsel %vm2433_vm1, 1, %v3670_v48  ;;  %v2370_v3 = vmul.f32 2.0, %v2296_v31  ;;  %2559 = vst [vmem:[%s5689_s20 + $0xe0] sm:$0xff] %v2495_v41 }
 0x2ac   : > { %2561 = vst [vmem:[%s5689_s20 + $0xf0] sm:$0xff] %v2497_v56  ;;  %vm2432_vm12 = vcmp.gt.f32.partialorder %v2368_v59, 4.0 }
 0x2ad   : > { %vm2434_vm13 = vcmp.gt.f32.partialorder %v2370_v3, 4.0  ;;  %v2496_v28 = vsel %vm2432_vm12, 1, %v3670_v48 }
 0x2ae   : > { %v2498_v20 = vsel %vm2434_vm13, 1, %v3670_v48  ;;  %2560 = vst [vmem:[%s5689_s20 + $0xe8] sm:$0xff] %v2496_v28 }
 0x2af   : > { %v2074_v54 = vpop.f32.mrb[16].mxu0  ;;  %2562 = vst [vmem:[%s5689_s20 + $0xf8] sm:$0xff] %v2498_v20 }
 0x2b0   : > { %v2300_v63 = vpop.f32.mrb[16].mxu1  ;;  %v2371_v57 = vmul.f32 2.0, %v2074_v54  ;;  %v2076_v16 = vpop.f32.mrb[17].mxu0 }
 0x2b1   : > { %v2373_v6 = vmul.f32 2.0, %v2300_v63  ;;  %v2302_v50 = vpop.f32.mrb[17].mxu1  ;;  %v2372_v8 = vmul.f32 2.0, %v2076_v16  ;;  %v2078_v12 = vpop.f32.mrb[18].mxu0 }
 0x2b2   : > { %v2374_v9 = vmul.f32 2.0, %v2302_v50  ;;  %v2304_v21 = vpop.f32.mrb[18].mxu1  ;;  %vm2435_vm8 = vcmp.gt.f32.partialorder %v2371_v57, 4.0  ;;  %v2375_v47 = vmul.f32 2.0, %v2078_v12  ;;  %v2080_v11 = vpop.f32.mrb[19].mxu0 }
 0x2b3   : > { %vm2437_vm2 = vcmp.gt.f32.partialorder %v2373_v6, 4.0  ;;  %v2377_v27 = vmul.f32 2.0, %v2304_v21  ;;  %v2306_v29 = vpop.f32.mrb[19].mxu1  ;;  %v2499_v34 = vsel %vm2435_vm8, 1, %v3670_v48  ;;  %vm2436_vm9 = vcmp.gt.f32.partialorder %v2372_v8, 4.0 }
 0x2b4   : > { %v2501_v13 = vsel %vm2437_vm2, 1, %v3670_v48  ;;  %vm2438_vm6 = vcmp.gt.f32.partialorder %v2374_v9, 4.0  ;;  %2563 = vst [vmem:[%s5689_s20 + $0x100] sm:$0xff] %v2499_v34  ;;  %v2500_v36 = vsel %vm2436_vm9, 1, %v3670_v48  ;;  %vm2439_vm5 = vcmp.gt.f32.partialorder %v2375_v47, 4.0 }
 0x2b5   : > { %2565 = vst [vmem:[%s5689_s20 + $0x110] sm:$0xff] %v2501_v13  ;;  %v2502_v32 = vsel %vm2438_vm6, 1, %v3670_v48  ;;  %vm2441_vm4 = vcmp.gt.f32.partialorder %v2377_v27, 4.0  ;;  %2564 = vst [vmem:[%s5689_s20 + $0x108] sm:$0xff] %v2500_v36  ;;  %v2503_v42 = vsel %vm2439_vm5, 1, %v3670_v48  ;;  %v2376_v10 = vmul.f32 2.0, %v2080_v11 }
 0x2b6   : > { %2566 = vst [vmem:[%s5689_s20 + $0x118] sm:$0xff] %v2502_v32  ;;  %v2505_v52 = vsel %vm2441_vm4, 1, %v3670_v48  ;;  %v2378_v4 = vmul.f32 2.0, %v2306_v29  ;;  %2567 = vst [vmem:[%s5689_s20 + $0x120] sm:$0xff] %v2503_v42 }
 0x2b7   : > { %2569 = vst [vmem:[%s5689_s20 + $0x130] sm:$0xff] %v2505_v52  ;;  %vm2440_vm10 = vcmp.gt.f32.partialorder %v2376_v10, 4.0 }
 0x2b8   : > { %vm2442_vm15 = vcmp.gt.f32.partialorder %v2378_v4, 4.0  ;;  %v2504_v30 = vsel %vm2440_vm10, 1, %v3670_v48 }
 0x2b9   : > { %v2506_v43 = vsel %vm2442_vm15, 1, %v3670_v48  ;;  %2568 = vst [vmem:[%s5689_s20 + $0x128] sm:$0xff] %v2504_v30 }
 0x2ba   : > { %2570 = vst [vmem:[%s5689_s20 + $0x138] sm:$0xff] %v2506_v43 }
 0x2bb   : > { %v2084_v35 = vpop.f32.mrb[20].mxu0 }
 0x2bc   : > { %v2310_v19 = vpop.f32.mrb[20].mxu1  ;;  %v2379_v2 = vmul.f32 2.0, %v2084_v35  ;;  %v2086_v22 = vpop.f32.mrb[21].mxu0 }
 0x2bd   : > { %v2381_v24 = vmul.f32 2.0, %v2310_v19  ;;  %v2312_v55 = vpop.f32.mrb[21].mxu1  ;;  %v2380_v23 = vmul.f32 2.0, %v2086_v22  ;;  %v2088_v49 = vpop.f32.mrb[22].mxu0 }
 0x2be   : > { %v2382_v40 = vmul.f32 2.0, %v2312_v55  ;;  %v2314_v61 = vpop.f32.mrb[22].mxu1  ;;  %vm2443_vm0 = vcmp.gt.f32.partialorder %v2379_v2, 4.0  ;;  %v2383_v58 = vmul.f32 2.0, %v2088_v49  ;;  %v2090_v38 = vpop.f32.mrb[23].mxu0 }
 0x2bf   : > { %vm2445_vm14 = vcmp.gt.f32.partialorder %v2381_v24, 4.0  ;;  %v2385_v39 = vmul.f32 2.0, %v2314_v61  ;;  %v2316_v51 = vpop.f32.mrb[23].mxu1  ;;  %v2507_v26 = vsel %vm2443_vm0, 1, %v3670_v48  ;;  %vm2444_vm3 = vcmp.gt.f32.partialorder %v2380_v23, 4.0 }
 0x2c0   : > { %v2509_v45 = vsel %vm2445_vm14, 1, %v3670_v48  ;;  %vm2446_vm7 = vcmp.gt.f32.partialorder %v2382_v40, 4.0  ;;  %2571 = vst [vmem:[%s5689_s20 + $0x140] sm:$0xff] %v2507_v26  ;;  %v2508_v7 = vsel %vm2444_vm3, 1, %v3670_v48  ;;  %vm2447_vm11 = vcmp.gt.f32.partialorder %v2383_v58, 4.0 }
 0x2c1   : > { %2573 = vst [vmem:[%s5689_s20 + $0x150] sm:$0xff] %v2509_v45  ;;  %v2510_v14 = vsel %vm2446_vm7, 1, %v3670_v48  ;;  %vm2449_vm1 = vcmp.gt.f32.partialorder %v2385_v39, 4.0  ;;  %2572 = vst [vmem:[%s5689_s20 + $0x148] sm:$0xff] %v2508_v7  ;;  %v2511_v46 = vsel %vm2447_vm11, 1, %v3670_v48  ;;  %v2384_v1 = vmul.f32 2.0, %v2090_v38 }
 0x2c2   : > { %2574 = vst [vmem:[%s5689_s20 + $0x158] sm:$0xff] %v2510_v14  ;;  %v2513_v15 = vsel %vm2449_vm1, 1, %v3670_v48  ;;  %v2386_v5 = vmul.f32 2.0, %v2316_v51  ;;  %2575 = vst [vmem:[%s5689_s20 + $0x160] sm:$0xff] %v2511_v46 }
 0x2c3   : > { %2577 = vst [vmem:[%s5689_s20 + $0x170] sm:$0xff] %v2513_v15  ;;  %vm2448_vm12 = vcmp.gt.f32.partialorder %v2384_v1, 4.0  ;;  %v2094_v18 = vpop.f32.mrb[24].mxu0 }
 0x2c4   : > { %vm2450_vm13 = vcmp.gt.f32.partialorder %v2386_v5, 4.0  ;;  %v2320_v60 = vpop.f32.mrb[24].mxu1  ;;  %v2512_v53 = vsel %vm2448_vm12, 1, %v3670_v48  ;;  %v2387_v17 = vmul.f32 2.0, %v2094_v18  ;;  %v2096_v31 = vpop.f32.mrb[25].mxu0 }
 0x2c5   : > { %v2514_v62 = vsel %vm2450_vm13, 1, %v3670_v48  ;;  %v2389_v0 = vmul.f32 2.0, %v2320_v60  ;;  %v2322_v33 = vpop.f32.mrb[25].mxu1  ;;  %2576 = vst [vmem:[%s5689_s20 + $0x168] sm:$0xff] %v2512_v53  ;;  %v2388_v25 = vmul.f32 2.0, %v2096_v31  ;;  %v2098_v44 = vpop.f32.mrb[26].mxu0 }
 0x2c6   : > { %2578 = vst [vmem:[%s5689_s20 + $0x178] sm:$0xff] %v2514_v62  ;;  %v2390_v37 = vmul.f32 2.0, %v2322_v33  ;;  %v2324_v41 = vpop.f32.mrb[26].mxu1  ;;  %vm2451_vm8 = vcmp.gt.f32.partialorder %v2387_v17, 4.0  ;;  %v2391_v56 = vmul.f32 2.0, %v2098_v44  ;;  %v2100_v3 = vpop.f32.mrb[27].mxu0 }
 0x2c7   : > { %vm2453_vm2 = vcmp.gt.f32.partialorder %v2389_v0, 4.0  ;;  %v2393_v59 = vmul.f32 2.0, %v2324_v41  ;;  %v2326_v54 = vpop.f32.mrb[27].mxu1  ;;  %v2515_v63 = vsel %vm2451_vm8, 1, %v3670_v48  ;;  %vm2452_vm9 = vcmp.gt.f32.partialorder %v2388_v25, 4.0 }
 0x2c8   : > { %v2517_v28 = vsel %vm2453_vm2, 1, %v3670_v48  ;;  %vm2454_vm6 = vcmp.gt.f32.partialorder %v2390_v37, 4.0  ;;  %2579 = vst [vmem:[%s5689_s20 + $0x180] sm:$0xff] %v2515_v63  ;;  %v2516_v20 = vsel %vm2452_vm9, 1, %v3670_v48  ;;  %vm2455_vm5 = vcmp.gt.f32.partialorder %v2391_v56, 4.0 }
 0x2c9   : > { %2581 = vst [vmem:[%s5689_s20 + $0x190] sm:$0xff] %v2517_v28  ;;  %v2518_v57 = vsel %vm2454_vm6, 1, %v3670_v48  ;;  %vm2457_vm4 = vcmp.gt.f32.partialorder %v2393_v59, 4.0  ;;  %2580 = vst [vmem:[%s5689_s20 + $0x188] sm:$0xff] %v2516_v20  ;;  %v2519_v6 = vsel %vm2455_vm5, 1, %v3670_v48  ;;  %v2392_v50 = vmul.f32 2.0, %v2100_v3 }
 0x2ca   : > { %2582 = vst [vmem:[%s5689_s20 + $0x198] sm:$0xff] %v2518_v57  ;;  %v2521_v16 = vsel %vm2457_vm4, 1, %v3670_v48  ;;  %v2394_v8 = vmul.f32 2.0, %v2326_v54  ;;  %2583 = vst [vmem:[%s5689_s20 + $0x1a0] sm:$0xff] %v2519_v6 }
 0x2cb   : > { %2585 = vst [vmem:[%s5689_s20 + $0x1b0] sm:$0xff] %v2521_v16  ;;  %vm2456_vm10 = vcmp.gt.f32.partialorder %v2392_v50, 4.0  ;;  %v2104_v9 = vpop.f32.mrb[28].mxu0 }
 0x2cc   : > { %vm2458_vm15 = vcmp.gt.f32.partialorder %v2394_v8, 4.0  ;;  %v2330_v12 = vpop.f32.mrb[28].mxu1  ;;  %v2520_v21 = vsel %vm2456_vm10, 1, %v3670_v48  ;;  %v2395_v27 = vmul.f32 2.0, %v2104_v9  ;;  %v2106_v29 = vpop.f32.mrb[29].mxu0 }
 0x2cd   : > { %v2522_v47 = vsel %vm2458_vm15, 1, %v3670_v48  ;;  %v2397_v11 = vmul.f32 2.0, %v2330_v12  ;;  %v2332_v34 = vpop.f32.mrb[29].mxu1  ;;  %2584 = vst [vmem:[%s5689_s20 + $0x1a8] sm:$0xff] %v2520_v21  ;;  %v2396_v13 = vmul.f32 2.0, %v2106_v29  ;;  %v2108_v32 = vpop.f32.mrb[30].mxu0 }
 0x2ce   : > { %2586 = vst [vmem:[%s5689_s20 + $0x1b8] sm:$0xff] %v2522_v47  ;;  %v2398_v36 = vmul.f32 2.0, %v2332_v34  ;;  %v2334_v42 = vpop.f32.mrb[30].mxu1  ;;  %vm2459_vm0 = vcmp.gt.f32.partialorder %v2395_v27, 4.0  ;;  %v2399_v52 = vmul.f32 2.0, %v2108_v32  ;;  %v2110_v4 = vpop.f32.mrb[31].mxu0 }
 0x2cf   : > { %vm2461_vm14 = vcmp.gt.f32.partialorder %v2397_v11, 4.0  ;;  %v2401_v10 = vmul.f32 2.0, %v2334_v42  ;;  %v2336_v35 = vpop.f32.mrb[31].mxu1  ;;  %v2523_v19 = vsel %vm2459_vm0, 1, %v3670_v48  ;;  %vm2460_vm3 = vcmp.gt.f32.partialorder %v2396_v13, 4.0 }
 0x2d0   : > { %v2525_v30 = vsel %vm2461_vm14, 1, %v3670_v48  ;;  %vm2462_vm7 = vcmp.gt.f32.partialorder %v2398_v36, 4.0  ;;  %2587 = vst [vmem:[%s5689_s20 + $0x1c0] sm:$0xff] %v2523_v19  ;;  %v2524_v43 = vsel %vm2460_vm3, 1, %v3670_v48  ;;  %vm2463_vm11 = vcmp.gt.f32.partialorder %v2399_v52, 4.0 }
 0x2d1   : > { %2589 = vst [vmem:[%s5689_s20 + $0x1d0] sm:$0xff] %v2525_v30  ;;  %v2526_v2 = vsel %vm2462_vm7, 1, %v3670_v48  ;;  %vm2465_vm1 = vcmp.gt.f32.partialorder %v2401_v10, 4.0  ;;  %2588 = vst [vmem:[%s5689_s20 + $0x1c8] sm:$0xff] %v2524_v43  ;;  %v2527_v24 = vsel %vm2463_vm11, 1, %v3670_v48  ;;  %v2400_v55 = vmul.f32 2.0, %v2110_v4 }
 0x2d2   : > { %2590 = vst [vmem:[%s5689_s20 + $0x1d8] sm:$0xff] %v2526_v2  ;;  %v2529_v22 = vsel %vm2465_vm1, 1, %v3670_v48  ;;  %v2402_v23 = vmul.f32 2.0, %v2336_v35  ;;  %2591 = vst [vmem:[%s5689_s20 + $0x1e0] sm:$0xff] %v2527_v24 }
 0x2d3   : > { %2593 = vst [vmem:[%s5689_s20 + $0x1f0] sm:$0xff] %v2529_v22  ;;  %vm2464_vm12 = vcmp.gt.f32.partialorder %v2400_v55, 4.0 }
 0x2d4   : > { %vm2466_vm13 = vcmp.gt.f32.partialorder %v2402_v23, 4.0  ;;  %v2528_v40 = vsel %vm2464_vm12, 1, %v3670_v48 }
 0x2d5   : > { %v2530_v49 = vsel %vm2466_vm13, 1, %v3670_v48  ;;  %2592 = vst [vmem:[%s5689_s20 + $0x1e8] sm:$0xff] %v2528_v40 }
 0x2d6   : > { %2594 = vst [vmem:[%s5689_s20 + $0x1f8] sm:$0xff] %v2530_v49 }
 0x2d7   : > { %3552 = shalt.err (!%p3549_p3)
}
 0x2d8   : > { %s3553_s1 = scalar_lea.hbm %s5824_s26, 8192  ;;  %s3557_s24 = scalar_lea.hbm %s5895_s2, 32768 }
 0x2d9   : > { %p3554_p10 = scmp.ne.s32.totalorder %s5824_s26, %s3553_s1  ;;  %p3558_p9 = scmp.lt.u32.totalorder %s5824_s26, %s5895_s2 }
 0x2da   : > { %p3559_p13 = scmp.lt.u32.totalorder %s3557_s24, %s3553_s1  ;;  %p3561_p7 = scmp.lt.u32.totalorder %s3553_s1, %s5824_s26 }
 0x2db   : > { %p3555_p11 = pnand %p3554_p10, %p6214_p2 }
 0x2dc   : > { %p3560_p12 = por %p3559_p13, %p3558_p9 }
 0x2dd   : > { %p3556_p6 = pneg %p3555_p11 }
 0x2de   : > { %p3562_p4 = por %p3561_p7, %p3560_p12 }
 0x2e0   : > { %p3563_p0 = pnand %p3562_p4, %p3556_p6 }
 0x2e2   : > { %3566 = shalt.err (!%p3563_p0)
}
 0x2e3   : > { %s3673_s8 = smov 512   ;;  %s3674_s12 = smov 1024  }
 0x2e4   : > { %s3675_s27 = smov 32  }
 0x2e5   : > { %3166 = dma.vmem_to_hbm [thread:$0]  (%p6214_p2), %s5817_s15, 8192, %s5824_s26, %s5832_s29, %s3673_s8, %s3674_s12, %s3675_s27  }
 0x2e6 PF: > { %p3177_p1 = scmp.ge.s32.totalorder %s3661_s19, 2  ;;  %s2627_s21 = sand.u32 1, %s3621_s9  }
 0x2e7   : > { %p6215_p5 = scmp.ne.s32.totalorder %s5951_s6, 0  ;;  %s2628_s30 = scalar_lea.sflag [#allocation4], %s2627_s21 }
 0x2e9   : > { %p3173_p8 = pnand %p3177_p1, %p6215_p5 }
 0x2eb   : > { %3616 = dma.done.wait (!%p3173_p8), %s2628_s30, 8192  }
 0x2ec   : > { %3618 = vsyncadd (!%p3173_p8), %s2628_s30, 4294959104  ;;  %s18_s19 = sadd.s32 1, %s3661_s19   ;;  %s6216_s9 = smov %s3625_s10 }
 0x2ed   : > { %p15_p3 = scmp.ge.s32.totalorder %s18_s19, 6   ;;  %s6217_s10 = smov %s3629_s11 }
 0x2ee   : > { %s6218_s11 = smov %s3781_s5  ;;  %s6219_s12 = smov %s3637_s13 }
 0x2ef   : > { %s6220_s13 = smov %s3641_s14  ;;  %s6221_s14 = smov %s3778_s4 }
 0x2f0   : > { %s6222_s15 = smov %s3653_s17  ;;  %s6223_s16 = smov %s3657_s18 }
 0x2f1   : > { %s6224_s17 = smov %s6227_s22  ;;  %s6225_s18 = smov %s6231_s23 }
 0x2f2   :  { %17 = sbr.rel (!%p15_p3) target bundleno = 11 (0xb), region = 76 }
 0x2f9   :  { %2633 = vsyncpa [#allocation3], 1 }
 0x2fa   :  { %2635 = vsyncpa [#allocation3 + $0x1], 1 }
 0x2fb   :  { %2636 = vsyncpa [#allocation4], 1 }
 0x2fc   :  { %2638 = vsyncpa [#allocation4 + $0x1], 1 }

</bundles_post_ra>
